<compile_context>
chip_gen: v7x
topology: tpu7x:2x2x1
jax: 0.10.0
libtpu: 0.0.40
codegen_flags: <defaults>
</compile_context>

<pallas_src>
import jax
import jax.numpy as jnp
from jax.experimental import pallas as pl
from jax.experimental.pallas import tpu as pltpu


IN_DIM = 28 * 28        # 784
IN_PAD = 896            # 7 * 128 (lane-aligned feature dim)
HID = 256
LATENT = 10
LAT_PAD = 128           # latent padded to one full lane group
HEAD = 2 * LAT_PAD      # fused [mu | log_var] head width


def _round_up(x, m):
    return (x + m - 1) // m * m


def vae_kernel(x_ref, eps_ref,
               w1_ref, b1_ref,
               wmv_ref, bmv_ref,
               wd1_ref, bd1_ref,
               wd2_ref, bd2_ref,
               out_ref, muvar_ref):
    x = x_ref[...]                                               # (TB, 896) bf16

    # encoder: Linear(784->256) + Tanh (K padded to 896 with zeros)
    h = jnp.tanh(
        jnp.dot(x, w1_ref[...], preferred_element_type=jnp.float32) + b1_ref[...]
    )                                                            # (TB, 256) f32

    # fused fc_mu / fc_var: one lane-dense matmul, mu in [:128), log_var in [128:256)
    head = jnp.dot(h.astype(jnp.bfloat16), wmv_ref[...],
                   preferred_element_type=jnp.float32) + bmv_ref[...]   # (TB, 256) f32
    mu = head[:, :LAT_PAD]                                       # (TB, 128)
    log_var = head[:, LAT_PAD:]                                  # (TB, 128)

    # reparameterize: z = mu + eps * exp(0.5 * log_var)
    # padded lanes: mu=0, log_var=0 -> std=1, eps=0 -> z=0 (so padding stays inert)
    z = mu + eps_ref[...] * jnp.exp(0.5 * log_var)               # (TB, 128) f32

    # decoder: Linear(10->256)+Tanh (K padded to 128), Linear(256->784)+Sigmoid (N padded to 896)
    hd = jnp.tanh(
        jnp.dot(z.astype(jnp.bfloat16), wd1_ref[...],
                preferred_element_type=jnp.float32) + bd1_ref[...]
    )                                                            # (TB, 256) f32
    logits = jnp.dot(hd.astype(jnp.bfloat16), wd2_ref[...],
                     preferred_element_type=jnp.float32) + bd2_ref[...]  # (TB, 896) f32

    out_ref[...] = jax.nn.sigmoid(logits)                        # EUP, not VALU divide
    muvar_ref[...] = head                                        # lane-dense head writeback


def _prepare_params(params):
    """Pad / fuse / cast the PyTorch-layout params for the kernel.

    Inputs are (in, out)-layout f32 weights and (1, out) f32 biases. Outputs:
      w1   (896, 256) bf16   b1  (1, 256) f32
      wmv  (256, 256) bf16   bmv (1, 256) f32   (mu cols 0:10, log_var cols 128:138)
      wd1  (128, 256) bf16   bd1 (1, 256) f32
      wd2  (256, 896) bf16   bd2 (1, 896) f32
    """
    (w1, b1, wmu, bmu, wvar, bvar, wd1, bd1, wd2, bd2) = params

    w1p = jnp.zeros((IN_PAD, HID), jnp.float32).at[:IN_DIM].set(w1).astype(jnp.bfloat16)
    b1p = b1.reshape(1, HID).astype(jnp.float32)

    wmv = jnp.zeros((HID, HEAD), jnp.float32)
    wmv = wmv.at[:, :LATENT].set(wmu).at[:, LAT_PAD:LAT_PAD + LATENT].set(wvar)
    wmv = wmv.astype(jnp.bfloat16)
    bmv = jnp.zeros((1, HEAD), jnp.float32)
    bmv = bmv.at[0, :LATENT].set(bmu.reshape(-1)).at[0, LAT_PAD:LAT_PAD + LATENT].set(bvar.reshape(-1))

    wd1p = jnp.zeros((LAT_PAD, HID), jnp.float32).at[:LATENT].set(wd1).astype(jnp.bfloat16)
    bd1p = bd1.reshape(1, HID).astype(jnp.float32)

    wd2p = jnp.zeros((HID, IN_PAD), jnp.float32).at[:, :IN_DIM].set(wd2).astype(jnp.bfloat16)
    bd2p = jnp.zeros((1, IN_PAD), jnp.float32).at[0, :IN_DIM].set(bd2.reshape(-1))

    return w1p, b1p, wmv, bmv, wd1p, bd1p, wd2p, bd2p


def vae_forward(x_nchw, eps, params, *, tile_b=256):
    """x_nchw: (B, 1, 28, 28) float32, eps: (B, 10) float32 -> (recon, mu, log_var)."""
    B = x_nchw.shape[0]

    # Batch tile: multiple of 16 (bf16 sublane packing); cap at `tile_b` for the MXU.
    tb = min(tile_b, _round_up(B, 16))
    b_pad = _round_up(B, tb)
    grid = (b_pad // tb,)

    # glue: x.view(B, -1), pad features 784->896 and batch to b_pad, cast to bf16.
    x_flat = x_nchw.reshape(B, -1).astype(jnp.float32)
    x_pad = jnp.pad(x_flat, ((0, b_pad - B), (0, IN_PAD - IN_DIM))).astype(jnp.bfloat16)
    eps_pad = jnp.pad(eps.astype(jnp.float32), ((0, b_pad - B), (0, LAT_PAD - LATENT)))

    w1p, b1p, wmv, bmv, wd1p, bd1p, wd2p, bd2p = _prepare_params(params)

    out_shapes = (
        jax.ShapeDtypeStruct((b_pad, IN_PAD), jnp.float32),   # recon (padded)
        jax.ShapeDtypeStruct((b_pad, HEAD), jnp.float32),     # fused [mu | log_var]
    )

    in_specs = [
        pl.BlockSpec((tb, IN_PAD), lambda i: (i, 0)),         # x tile
        pl.BlockSpec((tb, LAT_PAD), lambda i: (i, 0)),        # eps tile
        pl.BlockSpec((IN_PAD, HID), lambda i: (0, 0)),        # w1 (resident)
        pl.BlockSpec((1, HID), lambda i: (0, 0)),             # b1
        pl.BlockSpec((HID, HEAD), lambda i: (0, 0)),          # fused mu/var weight
        pl.BlockSpec((1, HEAD), lambda i: (0, 0)),            # fused mu/var bias
        pl.BlockSpec((LAT_PAD, HID), lambda i: (0, 0)),       # wd1
        pl.BlockSpec((1, HID), lambda i: (0, 0)),             # bd1
        pl.BlockSpec((HID, IN_PAD), lambda i: (0, 0)),        # wd2
        pl.BlockSpec((1, IN_PAD), lambda i: (0, 0)),          # bd2
    ]
    out_specs = (
        pl.BlockSpec((tb, IN_PAD), lambda i: (i, 0)),
        pl.BlockSpec((tb, HEAD), lambda i: (i, 0)),
    )

    recon_pad, muvar = pl.pallas_call(
        vae_kernel,
        out_shape=out_shapes,
        grid=grid,
        in_specs=in_specs,
        out_specs=out_specs,
        compiler_params=pltpu.CompilerParams(
            dimension_semantics=("parallel",),
        ),
    )(x_pad, eps_pad, w1p, b1p, wmv, bmv, wd1p, bd1p, wd2p, bd2p)

    recon = recon_pad[:B, :IN_DIM]
    mu = muvar[:B, :LATENT]
    log_var = muvar[:B, LAT_PAD:LAT_PAD + LATENT]
    return recon, mu, log_var


def init_params(key):
    """Deterministic init matching PyTorch nn.Linear shapes.

    PyTorch stores Linear weight as (out, in); we pre-transpose to (in, out)
    so the kernel computes x @ W + b (same math as x @ W_pt.T + b).
    Init: U(-1/sqrt(fan_in), 1/sqrt(fan_in)), like PyTorch's default.
    """
    def linear(key, fan_in, fan_out):
        kw, kb = jax.random.split(key)
        bound = 1.0 / jnp.sqrt(fan_in)
        w = jax.random.uniform(kw, (fan_in, fan_out), jnp.float32, -bound, bound)
        b = jax.random.uniform(kb, (1, fan_out), jnp.float32, -bound, bound)
        return w, b

    k1, k2, k3, k4, k5 = jax.random.split(key, 5)
    w1, b1 = linear(k1, IN_DIM, HID)      # encoder Linear(784, 256)
    wmu, bmu = linear(k2, HID, LATENT)    # fc_mu Linear(256, 10)
    wvar, bvar = linear(k3, HID, LATENT)  # fc_var Linear(256, 10)
    wd1, bd1 = linear(k4, LATENT, HID)    # decoder Linear(10, 256)
    wd2, bd2 = linear(k5, HID, IN_DIM)    # decoder Linear(256, 784)
    return (w1, b1, wmu, bmu, wvar, bvar, wd1, bd1, wd2, bd2)


if __name__ == "__main__":
    key = jax.random.PRNGKey(0)
    k_params, k_x, k_eps = jax.random.split(key, 3)

    B = 8
    x = jax.random.uniform(k_x, (B, 1, 28, 28), jnp.float32)      # fake MNIST batch
    eps = jax.random.normal(k_eps, (B, LATENT), jnp.float32)      # reparam noise
    params = init_params(k_params)

    out, mu, log_var = vae_forward(x, eps, params)
    jax.block_until_ready((out, mu, log_var))

    # Reference mirroring the kernel's dtype strategy (bf16 matmul inputs, f32 accumulation).
    xf = x.reshape(B, -1)
    (w1, b1, wmu, bmu, wvar, bvar, wd1, bd1, wd2, bd2) = params
    bf = jnp.bfloat16

    def mm(a, w):
        return jnp.dot(a.astype(bf), w.astype(bf), preferred_element_type=jnp.float32)

    h = jnp.tanh(mm(xf, w1) + b1)
    mu_ref = mm(h, wmu) + bmu
    lv_ref = mm(h, wvar) + bvar
    z = mu_ref + eps * jnp.exp(0.5 * lv_ref)
    hd = jnp.tanh(mm(z, wd1) + bd1)
    out_ref = jax.nn.sigmoid(mm(hd, wd2) + bd2)

    assert out.shape == (B, IN_DIM) and mu.shape == (B, LATENT) and log_var.shape == (B, LATENT)
    assert jnp.allclose(out, out_ref, atol=5e-3), float(jnp.max(jnp.abs(out - out_ref)))
    assert jnp.allclose(mu, mu_ref, atol=5e-3), float(jnp.max(jnp.abs(mu - mu_ref)))
    assert jnp.allclose(log_var, lv_ref, atol=5e-3), float(jnp.max(jnp.abs(log_var - lv_ref)))

    # Looser check against the pure-f32 math (bf16 quantization error only).
    h32 = jnp.tanh(xf @ w1 + b1)
    mu32 = h32 @ wmu + bmu
    lv32 = h32 @ wvar + bvar
    assert jnp.allclose(mu, mu32, atol=5e-2)
    assert jnp.allclose(log_var, lv32, atol=5e-2)

    print("KERNEL_OK")
</pallas_src>

<mosaic_0001>
module attributes {stable_mosaic.version = 11 : i64} {
  func.func @vae_kernel(%arg0: i32, %arg1: memref<16x896xbf16, #tpu.memory_space<vmem>>, %arg2: memref<16x128xf32, #tpu.memory_space<vmem>>, %arg3: memref<896x256xbf16, #tpu.memory_space<vmem>>, %arg4: memref<1x256xf32, #tpu.memory_space<vmem>>, %arg5: memref<256x256xbf16, #tpu.memory_space<vmem>>, %arg6: memref<1x256xf32, #tpu.memory_space<vmem>>, %arg7: memref<128x256xbf16, #tpu.memory_space<vmem>>, %arg8: memref<1x256xf32, #tpu.memory_space<vmem>>, %arg9: memref<256x896xbf16, #tpu.memory_space<vmem>>, %arg10: memref<1x896xf32, #tpu.memory_space<vmem>>, %arg11: memref<16x896xf32, #tpu.memory_space<vmem>>, %arg12: memref<16x256xf32, #tpu.memory_space<vmem>>) attributes {dimension_semantics = [#tpu.dimension_semantics<parallel>], iteration_bounds = array<i64: 1>, scalar_prefetch = 0 : i64, scratch_operands = 0 : i64, tpu.core_type = #tpu.core_type<tc>, window_params = [{transform_indices = @transform_0, window_bounds = array<i64: 16, 896>}, {transform_indices = @transform_1, window_bounds = array<i64: 16, 128>}, {pipeline_mode = #tpu.pipeline_mode<synchronous>, transform_indices = @transform_2, window_bounds = array<i64: 896, 256>}, {pipeline_mode = #tpu.pipeline_mode<synchronous>, transform_indices = @transform_3, window_bounds = array<i64: 1, 256>}, {pipeline_mode = #tpu.pipeline_mode<synchronous>, transform_indices = @transform_4, window_bounds = array<i64: 256, 256>}, {pipeline_mode = #tpu.pipeline_mode<synchronous>, transform_indices = @transform_5, window_bounds = array<i64: 1, 256>}, {pipeline_mode = #tpu.pipeline_mode<synchronous>, transform_indices = @transform_6, window_bounds = array<i64: 128, 256>}, {pipeline_mode = #tpu.pipeline_mode<synchronous>, transform_indices = @transform_7, window_bounds = array<i64: 1, 256>}, {pipeline_mode = #tpu.pipeline_mode<synchronous>, transform_indices = @transform_8, window_bounds = array<i64: 256, 896>}, {pipeline_mode = #tpu.pipeline_mode<synchronous>, transform_indices = @transform_9, window_bounds = array<i64: 1, 896>}, {transform_indices = @transform_10, window_bounds = array<i64: 16, 896>}, {transform_indices = @transform_11, window_bounds = array<i64: 16, 256>}]} {
    %c0 = arith.constant 0 : index
    %c0_0 = arith.constant 0 : index
    %0 = vector.load %arg1[%c0, %c0_0] : memref<16x896xbf16, #tpu.memory_space<vmem>>, vector<16x896xbf16>
    %c0_1 = arith.constant 0 : index
    %c0_2 = arith.constant 0 : index
    %1 = vector.load %arg3[%c0_1, %c0_2] : memref<896x256xbf16, #tpu.memory_space<vmem>>, vector<896x256xbf16>
    %cst = arith.constant dense<0.000000e+00> : vector<16x256xf32>
    %2 = tpu.matmul %0, %1, %cst {dimension_numbers = #tpu.dot_dimension_numbers<[1], [0], [0], [1], [0, 0, 1, 1], [], []>} : vector<16x896xbf16>, vector<896x256xbf16>, vector<16x256xf32> -> vector<16x256xf32>
    %c0_3 = arith.constant 0 : index
    %c0_4 = arith.constant 0 : index
    %3 = vector.load %arg4[%c0_3, %c0_4] : memref<1x256xf32, #tpu.memory_space<vmem>>, vector<1x256xf32>
    %4 = vector.broadcast %3 : vector<1x256xf32> to vector<16x256xf32>
    %5 = arith.addf %2, %4 : vector<16x256xf32>
    %6 = math.tanh %5 : vector<16x256xf32>
    %7 = arith.truncf %6 : vector<16x256xf32> to vector<16x256xbf16>
    %c0_5 = arith.constant 0 : index
    %c0_6 = arith.constant 0 : index
    %8 = vector.load %arg5[%c0_5, %c0_6] : memref<256x256xbf16, #tpu.memory_space<vmem>>, vector<256x256xbf16>
    %cst_7 = arith.constant dense<0.000000e+00> : vector<16x256xf32>
    %9 = tpu.matmul %7, %8, %cst_7 {dimension_numbers = #tpu.dot_dimension_numbers<[1], [0], [0], [1], [0, 0, 1, 1], [], []>} : vector<16x256xbf16>, vector<256x256xbf16>, vector<16x256xf32> -> vector<16x256xf32>
    %c0_8 = arith.constant 0 : index
    %c0_9 = arith.constant 0 : index
    %10 = vector.load %arg6[%c0_8, %c0_9] : memref<1x256xf32, #tpu.memory_space<vmem>>, vector<1x256xf32>
    %11 = vector.broadcast %10 : vector<1x256xf32> to vector<16x256xf32>
    %12 = arith.addf %9, %11 : vector<16x256xf32>
    %13 = vector.extract_strided_slice %12 {offsets = [0, 0], sizes = [16, 128], strides = [1, 1]} : vector<16x256xf32> to vector<16x128xf32>
    %14 = vector.extract_strided_slice %12 {offsets = [0, 128], sizes = [16, 128], strides = [1, 1]} : vector<16x256xf32> to vector<16x128xf32>
    %c0_10 = arith.constant 0 : index
    %c0_11 = arith.constant 0 : index
    %15 = vector.load %arg2[%c0_10, %c0_11] : memref<16x128xf32, #tpu.memory_space<vmem>>, vector<16x128xf32>
    %cst_12 = arith.constant 5.000000e-01 : f32
    %16 = vector.broadcast %cst_12 : f32 to vector<16x128xf32>
    %17 = arith.mulf %16, %14 : vector<16x128xf32>
    %18 = math.exp %17 : vector<16x128xf32>
    %19 = arith.mulf %15, %18 : vector<16x128xf32>
    %20 = arith.addf %13, %19 : vector<16x128xf32>
    %21 = arith.truncf %20 : vector<16x128xf32> to vector<16x128xbf16>
    %c0_13 = arith.constant 0 : index
    %c0_14 = arith.constant 0 : index
    %22 = vector.load %arg7[%c0_13, %c0_14] : memref<128x256xbf16, #tpu.memory_space<vmem>>, vector<128x256xbf16>
    %cst_15 = arith.constant dense<0.000000e+00> : vector<16x256xf32>
    %23 = tpu.matmul %21, %22, %cst_15 {dimension_numbers = #tpu.dot_dimension_numbers<[1], [0], [0], [1], [0, 0, 1, 1], [], []>} : vector<16x128xbf16>, vector<128x256xbf16>, vector<16x256xf32> -> vector<16x256xf32>
    %c0_16 = arith.constant 0 : index
    %c0_17 = arith.constant 0 : index
    %24 = vector.load %arg8[%c0_16, %c0_17] : memref<1x256xf32, #tpu.memory_space<vmem>>, vector<1x256xf32>
    %25 = vector.broadcast %24 : vector<1x256xf32> to vector<16x256xf32>
    %26 = arith.addf %23, %25 : vector<16x256xf32>
    %27 = math.tanh %26 : vector<16x256xf32>
    %28 = arith.truncf %27 : vector<16x256xf32> to vector<16x256xbf16>
    %c0_18 = arith.constant 0 : index
    %c0_19 = arith.constant 0 : index
    %29 = vector.load %arg9[%c0_18, %c0_19] : memref<256x896xbf16, #tpu.memory_space<vmem>>, vector<256x896xbf16>
    %cst_20 = arith.constant dense<0.000000e+00> : vector<16x896xf32>
    %30 = tpu.matmul %28, %29, %cst_20 {dimension_numbers = #tpu.dot_dimension_numbers<[1], [0], [0], [1], [0, 0, 1, 1], [], []>} : vector<16x256xbf16>, vector<256x896xbf16>, vector<16x896xf32> -> vector<16x896xf32>
    %c0_21 = arith.constant 0 : index
    %c0_22 = arith.constant 0 : index
    %31 = vector.load %arg10[%c0_21, %c0_22] : memref<1x896xf32, #tpu.memory_space<vmem>>, vector<1x896xf32>
    %32 = vector.broadcast %31 : vector<1x896xf32> to vector<16x896xf32>
    %33 = arith.addf %30, %32 : vector<16x896xf32>
    %34 = arith.negf %33 : vector<16x896xf32>
    %35 = math.exp %34 : vector<16x896xf32>
    %cst_23 = arith.constant 1.000000e+00 : f32
    %36 = vector.broadcast %cst_23 : f32 to vector<16x896xf32>
    %37 = arith.addf %36, %35 : vector<16x896xf32>
    %38 = arith.divf %36, %37 : vector<16x896xf32>
    %c0_24 = arith.constant 0 : index
    %c0_25 = arith.constant 0 : index
    %39 = vector.load %arg11[%c0_24, %c0_25] : memref<16x896xf32, #tpu.memory_space<vmem>>, vector<16x896xf32>
    tpu.vector_store %arg11[%c0_24, %c0_25], %38 {strides = array<i32>} : memref<16x896xf32, #tpu.memory_space<vmem>>, vector<16x896xf32>,
    %c0_26 = arith.constant 0 : index
    %c0_27 = arith.constant 0 : index
    %40 = vector.load %arg12[%c0_26, %c0_27] : memref<16x256xf32, #tpu.memory_space<vmem>>, vector<16x256xf32>
    tpu.vector_store %arg12[%c0_26, %c0_27], %12 {strides = array<i32>} : memref<16x256xf32, #tpu.memory_space<vmem>>, vector<16x256xf32>,
    return
  }
  func.func @transform_0(%arg0: i32) -> (i32, i32) {
    %c0_i32 = arith.constant 0 : i32
    %c0_i32_0 = arith.constant 0 : i32
    return %arg0, %c0_i32 : i32, i32
  }
  func.func @transform_1(%arg0: i32) -> (i32, i32) {
    %c0_i32 = arith.constant 0 : i32
    %c0_i32_0 = arith.constant 0 : i32
    return %arg0, %c0_i32 : i32, i32
  }
  func.func @transform_2(%arg0: i32) -> (i32, i32) {
    %c0_i32 = arith.constant 0 : i32
    %c0_i32_0 = arith.constant 0 : i32
    %c0_i32_1 = arith.constant 0 : i32
    return %c0_i32, %c0_i32_0 : i32, i32
  }
  func.func @transform_3(%arg0: i32) -> (i32, i32) {
    %c0_i32 = arith.constant 0 : i32
    %c0_i32_0 = arith.constant 0 : i32
    %c0_i32_1 = arith.constant 0 : i32
    return %c0_i32, %c0_i32_0 : i32, i32
  }
  func.func @transform_4(%arg0: i32) -> (i32, i32) {
    %c0_i32 = arith.constant 0 : i32
    %c0_i32_0 = arith.constant 0 : i32
    %c0_i32_1 = arith.constant 0 : i32
    return %c0_i32, %c0_i32_0 : i32, i32
  }
  func.func @transform_5(%arg0: i32) -> (i32, i32) {
    %c0_i32 = arith.constant 0 : i32
    %c0_i32_0 = arith.constant 0 : i32
    %c0_i32_1 = arith.constant 0 : i32
    return %c0_i32, %c0_i32_0 : i32, i32
  }
  func.func @transform_6(%arg0: i32) -> (i32, i32) {
    %c0_i32 = arith.constant 0 : i32
    %c0_i32_0 = arith.constant 0 : i32
    %c0_i32_1 = arith.constant 0 : i32
    return %c0_i32, %c0_i32_0 : i32, i32
  }
  func.func @transform_7(%arg0: i32) -> (i32, i32) {
    %c0_i32 = arith.constant 0 : i32
    %c0_i32_0 = arith.constant 0 : i32
    %c0_i32_1 = arith.constant 0 : i32
    return %c0_i32, %c0_i32_0 : i32, i32
  }
  func.func @transform_8(%arg0: i32) -> (i32, i32) {
    %c0_i32 = arith.constant 0 : i32
    %c0_i32_0 = arith.constant 0 : i32
    %c0_i32_1 = arith.constant 0 : i32
    return %c0_i32, %c0_i32_0 : i32, i32
  }
  func.func @transform_9(%arg0: i32) -> (i32, i32) {
    %c0_i32 = arith.constant 0 : i32
    %c0_i32_0 = arith.constant 0 : i32
    %c0_i32_1 = arith.constant 0 : i32
    return %c0_i32, %c0_i32_0 : i32, i32
  }
  func.func @transform_10(%arg0: i32) -> (i32, i32) {
    %c0_i32 = arith.constant 0 : i32
    %c0_i32_0 = arith.constant 0 : i32
    return %arg0, %c0_i32 : i32, i32
  }
  func.func @transform_11(%arg0: i32) -> (i32, i32) {
    %c0_i32 = arith.constant 0 : i32
    %c0_i32_0 = arith.constant 0 : i32
    return %arg0, %c0_i32 : i32, i32
  }
}

</mosaic_0001>

<bundles_post_ra>
// kernel: tpu_custom_call.1
= control target key start
LH: loop header
LB: loop body
LE: loop exit
PB: predicated region body
PF: predicated region fallthrough
CT: control target
= control target key end

     0   :  { %17 = vsyncpa [#allocation3], 0  ;;  %s3763_s0 = inlined_call_operand.hbm [shape: bf16[16,896], index: 0, kind: input, shape index: {}]   ;;  %s3764_s1 = inlined_call_operand.hbm [shape: f32[16,128], index: 1, kind: input, shape index: {}]   ;;  %s3765_s2 = inlined_call_operand.hbm [shape: bf16[896,256], index: 2, kind: input, shape index: {}]   ;;  %s3766_s3 = inlined_call_operand.vmem [shape: f32[1,256], index: 3, kind: input, shape index: {}]   ;;  %s3767_s4 = inlined_call_operand.hbm [shape: bf16[256,256], index: 4, kind: input, shape index: {}]   ;;  %s3768_s5 = inlined_call_operand.vmem [shape: f32[1,256], index: 5, kind: input, shape index: {}]   ;;  %s3769_s6 = inlined_call_operand.hbm [shape: bf16[128,256], index: 6, kind: input, shape index: {}]   ;;  %s3770_s7 = inlined_call_operand.vmem [shape: f32[1,256], index: 7, kind: input, shape index: {}]   ;;  %s3771_s8 = inlined_call_operand.hbm [shape: bf16[256,896], index: 8, kind: input, shape index: {}]   ;;  %s3772_s9 = inlined_call_operand.vmem [shape: f32[1,896], index: 9, kind: input, shape index: {}]   ;;  %s3773_s10 = inlined_call_operand.hbm [shape: f32[16,896], index: 10, kind: output, shape index: {0}]   ;;  %s3774_s11 = inlined_call_operand.hbm [shape: f32[16,256], index: 11, kind: output, shape index: {1}]  }
   0x1   :  { %18 = vsyncpa [#allocation6], 0 }
   0x2   :  { %19 = vsyncpa [#allocation9], 0 }
   0x3   :  { %20 = vsyncpa [#allocation12], 0 }
   0x4   :  { %21 = vsyncpa [#allocation4], 0 }
   0x5   :  { %22 = vsyncpa [#allocation15], 0  ;;  %s3516_s17 = smov [#allocation5]   ;;  %s3328_s21 = scalar_lea.hbm %s3764_s1, 256 }
   0x6   :  { %s40_s18 = sshll.u32 %s3516_s17, 4  ;;  %p3329_p0 = scmp.ne.s32.totalorder %s3764_s1, %s3328_s21  ;;  %s41_s18 = int_to_ptr.vmem [resolvable:$true] %s40_s18 }
   0x7   :  { %p3332_p1 = scmp.lt.u32.totalorder %s3328_s21, %s3764_s1 }
   0x9   :  { %p3334_p2 = pnand %p3332_p1, %p3329_p0 }
   0xb   :  { %3337 = shalt.err (!%p3334_p2)
}
   0xc   :  { %s3338_s26 = scalar_lea.vmem %s41_s18, 256  ;;  %p3343_p4 = scmp.lt.s32.totalorder %s41_s18, %s41_s18 }
   0xd   :  { %p3339_p3 = scmp.ne.s32.totalorder %s41_s18, %s3338_s26  ;;  %p3344_p5 = scmp.lt.s32.totalorder %s3338_s26, %s3338_s26 }
   0xf   :  { %p3345_p6 = por %p3344_p5, %p3343_p4 }
  0x11   :  { %p3346_p7 = pnand %p3345_p6, %p3339_p3 }
  0x13   :  { %3349 = shalt.err (!%p3346_p7)
}
  0x14   :  { %s3517_s27 = smov 128   ;;  %s3518_s28 = smov 8  }
  0x15   :  { %46 = dma.hbm_to_vmem [thread:$0]  %s3764_s1, 256, %s41_s18, [#allocation6], %s3517_s27, %s3517_s27, %s3518_s28  }
  0x16   :  { %s3519_s12 = smov [#allocation8]   ;;  %s3520_s14 = smov [#allocation2]  }
  0x17   :  { %s66_s13 = sshll.u32 %s3519_s12, 4  ;;  %s28_s15 = sshll.u32 %s3520_s14, 4  ;;  %s67_s13 = int_to_ptr.vmem [resolvable:$true] %s66_s13  ;;  %s29_s15 = int_to_ptr.vmem [resolvable:$true] %s28_s15 }
  0x18   :  { %s3350_s19 = scalar_lea.hbm %s3767_s4, 4096 }
  0x19   :  { %p3351_p8 = scmp.ne.s32.totalorder %s3767_s4, %s3350_s19  ;;  %p3354_p9 = scmp.lt.u32.totalorder %s3350_s19, %s3767_s4 }
  0x1b   :  { %p3356_p10 = pnand %p3354_p9, %p3351_p8 }
  0x1d   :  { %3359 = shalt.err (!%p3356_p10)
}
  0x1e   :  { %s3360_s1 = scalar_lea.vmem %s67_s13, 4096  ;;  %p3365_p12 = scmp.lt.s32.totalorder %s67_s13, %s67_s13 }
  0x1f   :  { %p3361_p11 = scmp.ne.s32.totalorder %s67_s13, %s3360_s1  ;;  %p3366_p13 = scmp.lt.s32.totalorder %s3360_s1, %s3360_s1 }
  0x21   :  { %p3367_p0 = por %p3366_p13, %p3365_p12 }
  0x23   :  { %p3368_p1 = pnand %p3367_p0, %p3361_p11 }
  0x25   :  { %3371 = shalt.err (!%p3368_p1)
}
  0x26   :  { %72 = dma.hbm_to_vmem [thread:$0]  %s3767_s4, 4096, %s67_s13, [#allocation9], %s3517_s27, %s3517_s27, %s3518_s28  }
  0x27   :  { %s3372_s29 = scalar_lea.hbm %s3763_s0, 896 }
  0x28   :  { %p3373_p2 = scmp.ne.s32.totalorder %s3763_s0, %s3372_s29  ;;  %p3376_p3 = scmp.lt.u32.totalorder %s3372_s29, %s3763_s0 }
  0x2a   :  { %p3378_p4 = pnand %p3376_p3, %p3373_p2 }
  0x2c   :  { %3381 = shalt.err (!%p3378_p4)
}
  0x2d   :  { %s3382_s17 = scalar_lea.vmem %s29_s15, 896  ;;  %p3387_p6 = scmp.lt.s32.totalorder %s29_s15, %s29_s15 }
  0x2e   :  { %p3383_p5 = scmp.ne.s32.totalorder %s29_s15, %s3382_s17  ;;  %p3388_p7 = scmp.lt.s32.totalorder %s3382_s17, %s3382_s17 }
  0x30   :  { %p3389_p8 = por %p3388_p7, %p3387_p6 }
  0x32   :  { %p3390_p9 = pnand %p3389_p8, %p3383_p5 }
  0x34   :  { %3393 = shalt.err (!%p3390_p9)
}
  0x35   :  { %s3521_s4 = smov 448   ;;  %s3522_s13 = smov 28  }
  0x36   :  { %34 = dma.hbm_to_vmem [thread:$0]  %s3763_s0, 896, %s29_s15, [#allocation3], %s3521_s4, %s3521_s4, %s3522_s13  }
  0x37   :  { %s3523_s21 = smov [#allocation7]   ;;  %s3524_s23 = smov [#allocation10]  }
  0x38   :  { %s52_s22 = sshll.u32 %s3523_s21, 4  ;;  %s80_s1 = sshll.u32 %s3524_s23, 4  ;;  %s53_s22 = int_to_ptr.vmem [resolvable:$true] %s52_s22  ;;  %s81_s1 = int_to_ptr.vmem [resolvable:$true] %s80_s1 }
  0x39   :  { %s3394_s25 = scalar_lea.hbm %s3765_s2, 14336 }
  0x3a   :  { %p3395_p10 = scmp.ne.s32.totalorder %s3765_s2, %s3394_s25  ;;  %p3398_p11 = scmp.lt.u32.totalorder %s3394_s25, %s3765_s2 }
  0x3c   :  { %p3400_p12 = pnand %p3398_p11, %p3395_p10 }
  0x3e   :  { %3403 = shalt.err (!%p3400_p12)
}
  0x3f   :  { %s3404_s0 = scalar_lea.vmem %s53_s22, 14336  ;;  %p3409_p0 = scmp.lt.s32.totalorder %s53_s22, %s53_s22 }
  0x40   :  { %p3405_p13 = scmp.ne.s32.totalorder %s53_s22, %s3404_s0  ;;  %p3410_p1 = scmp.lt.s32.totalorder %s3404_s0, %s3404_s0 }
  0x42   :  { %p3411_p2 = por %p3410_p1, %p3409_p0 }
  0x44   :  { %p3412_p3 = pnand %p3411_p2, %p3405_p13 }
  0x46   :  { %3415 = shalt.err (!%p3412_p3)
}
  0x47   :  { %58 = dma.hbm_to_vmem [thread:$0]  %s3765_s2, 14336, %s53_s22, [#allocation6], %s3517_s27, %s3517_s27, %s3518_s28  }
  0x48   :  { %s3416_s19 = scalar_lea.hbm %s3769_s6, 2048 }
  0x49   :  { %p3417_p4 = scmp.ne.s32.totalorder %s3769_s6, %s3416_s19  ;;  %p3420_p5 = scmp.lt.u32.totalorder %s3416_s19, %s3769_s6 }
  0x4b   :  { %p3422_p6 = pnand %p3420_p5, %p3417_p4 }
  0x4d   :  { %3425 = shalt.err (!%p3422_p6)
}
  0x4e   :  { %s3426_s24 = scalar_lea.vmem %s81_s1, 2048  ;;  %p3431_p8 = scmp.lt.s32.totalorder %s81_s1, %s81_s1 }
  0x4f   :  { %p3427_p7 = scmp.ne.s32.totalorder %s81_s1, %s3426_s24  ;;  %p3432_p9 = scmp.lt.s32.totalorder %s3426_s24, %s3426_s24 }
  0x51   :  { %p3433_p10 = por %p3432_p9, %p3431_p8 }
  0x53   :  { %p3434_p11 = pnand %p3433_p10, %p3427_p7 }
  0x55   :  { %3437 = shalt.err (!%p3434_p11)
}
  0x56   :  { %86 = dma.hbm_to_vmem [thread:$0]  %s3769_s6, 2048, %s81_s1, [#allocation9], %s3517_s27, %s3517_s27, %s3518_s28  }
  0x57   :  { %s3525_s25 = smov [#allocation11]   ;;  %s3438_s12 = scalar_lea.hbm %s3771_s8, 14336 }
  0x58   :  { %s94_s26 = sshll.u32 %s3525_s25, 4  ;;  %p3439_p12 = scmp.ne.s32.totalorder %s3771_s8, %s3438_s12  ;;  %s95_s26 = int_to_ptr.vmem [resolvable:$true] %s94_s26 }
  0x59   :  { %p3442_p13 = scmp.lt.u32.totalorder %s3438_s12, %s3771_s8 }
  0x5b   :  { %p3444_p0 = pnand %p3442_p13, %p3439_p12 }
  0x5d   :  { %3447 = shalt.err (!%p3444_p0)
}
  0x5e   :  { %s3448_s17 = scalar_lea.vmem %s95_s26, 14336  ;;  %p3453_p2 = scmp.lt.s32.totalorder %s95_s26, %s95_s26 }
  0x5f   :  { %p3449_p1 = scmp.ne.s32.totalorder %s95_s26, %s3448_s17  ;;  %p3454_p3 = scmp.lt.s32.totalorder %s3448_s17, %s3448_s17 }
  0x61   :  { %p3455_p4 = por %p3454_p3, %p3453_p2 }
  0x63   :  { %p3456_p5 = pnand %p3455_p4, %p3449_p1 }
  0x65   :  { %3459 = shalt.err (!%p3456_p5)
}
  0x66   :  { %100 = dma.hbm_to_vmem [thread:$0]  %s3771_s8, 14336, %s95_s26, [#allocation12], %s3521_s4, %s3521_s4, %s3522_s13  }
  0x67   :  { %3504 = dma.done.wait [#allocation3], 896  }
  0x68   :  { %3505 = vsyncadd [#allocation3], 4294966400 }
  0x69   :  { %3506 = dma.done.wait [#allocation6], 14592  }
  0x6a   :  { %3507 = vsyncadd [#allocation6], 4294952704 }
  0x6b   :  { %3508 = dma.done.wait [#allocation9], 6144  }
  0x6c   :  { %3509 = vsyncadd [#allocation9], 4294961152 }
  0x6d   :  { %3510 = dma.done.wait [#allocation12], 14336  }
  0x6e   :  { %3511 = vsyncadd [#allocation12], 4294952960  ;;  %v2842_v0 = vld [vmem:[#allocation7 + $0x4] ss:$8 sps:$4 sm:$0xff]   ;;  %v2844_v1 = vld [vmem:[#allocation7] ss:$8 sps:$4 sm:$0xff]  }
  0x6f   :  { %850 = vmatprep.subr.bf16.mxu0 %v2842_v0  ;;  %v2845_v2 = vld [vmem:[#allocation7 + $0x14] ss:$8 sps:$4 sm:$0xff]   ;;  %v2847_v3 = vld [vmem:[#allocation7 + $0x10] ss:$8 sps:$4 sm:$0xff]   ;;  %v2848_v4 = vld [vmem:[#allocation7 + $0x24] ss:$8 sps:$4 sm:$0xff]  }
  0x70   :  { %851 = vmatpush1.bf16.msra.mxu0 %v2844_v1  ;;  %v2850_v5 = vld [vmem:[#allocation7 + $0x20] ss:$8 sps:$4 sm:$0xff]   ;;  %v2851_v6 = vld [vmem:[#allocation7 + $0x34] ss:$8 sps:$4 sm:$0xff]   ;;  %v2853_v7 = vld [vmem:[#allocation7 + $0x30] ss:$8 sps:$4 sm:$0xff]  }
  0x71   :  { %852 = vmatprep.subr.bf16.mxu0 %v2845_v2  ;;  %v2854_v8 = vld [vmem:[#allocation7 + $0x44] ss:$8 sps:$4 sm:$0xff]   ;;  %v2856_v9 = vld [vmem:[#allocation7 + $0x40] ss:$8 sps:$4 sm:$0xff]   ;;  %v2857_v10 = vld [vmem:[#allocation7 + $0x54] ss:$8 sps:$4 sm:$0xff]  }
  0x72   :  { %v2859_v11 = vld [vmem:[#allocation7 + $0x50] ss:$8 sps:$4 sm:$0xff]   ;;  %v2860_v12 = vld [vmem:[#allocation7 + $0x64] ss:$8 sps:$4 sm:$0xff]   ;;  %v2862_v14 = vld [vmem:[#allocation7 + $0x60] ss:$8 sps:$4 sm:$0xff]  }
  0x73   :  { %v2892_v13 = vld [vmem:[#allocation2 + $0x4] ss:$28 sps:$4 sm:$0xff]   ;;  %v2866_v17 = vld [vmem:[#allocation7 + $0x84] ss:$8 sps:$4 sm:$0xff]   ;;  %v2868_v18 = vld [vmem:[#allocation7 + $0x80] ss:$8 sps:$4 sm:$0xff]  }
  0x74   :  { %853 = vmatpush1.bf16.msra.mxu0 %v2847_v3  ;;  %v2863_v15 = vld [vmem:[#allocation7 + $0x74] ss:$8 sps:$4 sm:$0xff]   ;;  %882 = vmatprep.mubr.bf16.mxu0 %v2892_v13  ;;  %v2865_v16 = vld [vmem:[#allocation7 + $0x70] ss:$8 sps:$4 sm:$0xff]   ;;  %v2872_v21 = vld [vmem:[#allocation7 + $0xa4] ss:$8 sps:$4 sm:$0xff]  }
  0x75   :  { %854 = vmatprep.subr.bf16.mxu0 %v2848_v4  ;;  %v2869_v19 = vld [vmem:[#allocation7 + $0x94] ss:$8 sps:$4 sm:$0xff]   ;;  %v2871_v20 = vld [vmem:[#allocation7 + $0x90] ss:$8 sps:$4 sm:$0xff]   ;;  %v2874_v22 = vld [vmem:[#allocation7 + $0xa0] ss:$8 sps:$4 sm:$0xff]  }
  0x76   :  { %v2875_v23 = vld [vmem:[#allocation7 + $0xb4] ss:$8 sps:$4 sm:$0xff]   ;;  %v2877_v24 = vld [vmem:[#allocation7 + $0xb0] ss:$8 sps:$4 sm:$0xff]   ;;  %v2878_v25 = vld [vmem:[#allocation7 + $0xc4] ss:$8 sps:$4 sm:$0xff]  }
  0x77   :  { %v2880_v26 = vld [vmem:[#allocation7 + $0xc0] ss:$8 sps:$4 sm:$0xff]   ;;  %v2881_v27 = vld [vmem:[#allocation7 + $0xd4] ss:$8 sps:$4 sm:$0xff]   ;;  %v2883_v28 = vld [vmem:[#allocation7 + $0xd0] ss:$8 sps:$4 sm:$0xff]  }
  0x78   :  { %855 = vmatpush1.bf16.msra.mxu0 %v2850_v5  ;;  %v2884_v29 = vld [vmem:[#allocation7 + $0xe4] ss:$8 sps:$4 sm:$0xff]   ;;  %v2886_v30 = vld [vmem:[#allocation7 + $0xe0] ss:$8 sps:$4 sm:$0xff]   ;;  %v2887_v31 = vld [vmem:[#allocation7 + $0xf4] ss:$8 sps:$4 sm:$0xff]  }
  0x79   :  { %856 = vmatprep.subr.bf16.mxu0 %v2851_v6  ;;  %v2889_v32 = vld [vmem:[#allocation7 + $0xf0] ss:$8 sps:$4 sm:$0xff]   ;;  %v2895_v33 = vld [vmem:[#allocation7 + $0x104] ss:$8 sps:$4 sm:$0xff]   ;;  %v2893_v35 = vld [vmem:[#allocation7 + $0x100] ss:$8 sps:$4 sm:$0xff]  }
  0x7a   :  { %v2890_v34 = vld [vmem:[#allocation2] ss:$28 sps:$4 sm:$0xff]   ;;  %v2943_v36 = vld [vmem:[#allocation2 + $0xc] ss:$28 sps:$4 sm:$0xff]  }
  0x7b   :  { %v2898_v37 = vld [vmem:[#allocation7 + $0x114] ss:$8 sps:$4 sm:$0xff]   ;;  %v2896_v38 = vld [vmem:[#allocation7 + $0x110] ss:$8 sps:$4 sm:$0xff]   ;;  %v2901_v39 = vld [vmem:[#allocation7 + $0x124] ss:$8 sps:$4 sm:$0xff]  }
  0x7c   :  { %857 = vmatpush1.bf16.msra.mxu0 %v2853_v7  ;;  %v2899_v40 = vld [vmem:[#allocation7 + $0x120] ss:$8 sps:$4 sm:$0xff]   ;;  %v2904_v41 = vld [vmem:[#allocation7 + $0x134] ss:$8 sps:$4 sm:$0xff]   ;;  %v2902_v42 = vld [vmem:[#allocation7 + $0x130] ss:$8 sps:$4 sm:$0xff]  }
  0x7d   :  { %858 = vmatprep.subr.bf16.mxu0 %v2854_v8  ;;  %v2907_v43 = vld [vmem:[#allocation7 + $0x144] ss:$8 sps:$4 sm:$0xff]   ;;  %v2905_v44 = vld [vmem:[#allocation7 + $0x140] ss:$8 sps:$4 sm:$0xff]   ;;  %v2910_v45 = vld [vmem:[#allocation7 + $0x154] ss:$8 sps:$4 sm:$0xff]  }
  0x7e   :  { %v2908_v46 = vld [vmem:[#allocation7 + $0x150] ss:$8 sps:$4 sm:$0xff]   ;;  %v2913_v47 = vld [vmem:[#allocation7 + $0x164] ss:$8 sps:$4 sm:$0xff]   ;;  %v2911_v48 = vld [vmem:[#allocation7 + $0x160] ss:$8 sps:$4 sm:$0xff]  }
  0x7f   :  { %v2916_v49 = vld [vmem:[#allocation7 + $0x174] ss:$8 sps:$4 sm:$0xff]   ;;  %v2914_v50 = vld [vmem:[#allocation7 + $0x170] ss:$8 sps:$4 sm:$0xff]   ;;  %v2919_v51 = vld [vmem:[#allocation7 + $0x184] ss:$8 sps:$4 sm:$0xff]  }
  0x80   :  { %859 = vmatpush1.bf16.msra.mxu0 %v2856_v9  ;;  %v2917_v52 = vld [vmem:[#allocation7 + $0x180] ss:$8 sps:$4 sm:$0xff]   ;;  %v2922_v53 = vld [vmem:[#allocation7 + $0x194] ss:$8 sps:$4 sm:$0xff]   ;;  %v3020_v54 = vld [vmem:[#allocation8 + $0x4] ss:$8 sps:$4 sm:$0xff]  }
  0x81   :  { %860 = vmatprep.subr.bf16.mxu0 %v2857_v10  ;;  %v3022_v55 = vld [vmem:[#allocation8] ss:$8 sps:$4 sm:$0xff]   ;;  %v3023_v56 = vld [vmem:[#allocation8 + $0x14] ss:$8 sps:$4 sm:$0xff]   ;;  %v2920_v57 = vld [vmem:[#allocation7 + $0x190] ss:$8 sps:$4 sm:$0xff]   ;;  %1232 = vmatprep.subr.bf16.mxu1 %v3020_v54 }
  0x82   :  { %v2925_v58 = vld [vmem:[#allocation7 + $0x1a4] ss:$8 sps:$4 sm:$0xff]   ;;  %1233 = vmatpush1.bf16.msra.mxu1 %v3022_v55  ;;  %v3025_v59 = vld [vmem:[#allocation8 + $0x10] ss:$8 sps:$4 sm:$0xff]   ;;  %v2923_v61 = vld [vmem:[#allocation7 + $0x1a0] ss:$8 sps:$4 sm:$0xff]  }
  0x83   :  { %1234 = vmatprep.subr.bf16.mxu1 %v3023_v56  ;;  %v3026_v60 = vld [vmem:[#allocation8 + $0x24] ss:$8 sps:$4 sm:$0xff]   ;;  %v2928_v62 = vld [vmem:[#allocation7 + $0x1b4] ss:$8 sps:$4 sm:$0xff]   ;;  %v2926_v63 = vld [vmem:[#allocation7 + $0x1b0] ss:$8 sps:$4 sm:$0xff]  }
  0x84   :  { %861 = vmatpush1.bf16.msra.mxu0 %v2859_v11  ;;  %v3028_v0 = vld [vmem:[#allocation8 + $0x20] ss:$8 sps:$4 sm:$0xff]   ;;  %v3029_v1 = vld [vmem:[#allocation8 + $0x34] ss:$8 sps:$4 sm:$0xff]   ;;  %v2931_v2 = vld [vmem:[#allocation7 + $0x1c4] ss:$8 sps:$4 sm:$0xff]  }
  0x85   :  { %862 = vmatprep.subr.bf16.mxu0 %v2860_v12  ;;  %v3031_v3 = vld [vmem:[#allocation8 + $0x30] ss:$8 sps:$4 sm:$0xff]   ;;  %v3032_v4 = vld [vmem:[#allocation8 + $0x44] ss:$8 sps:$4 sm:$0xff]   ;;  %v2929_v5 = vld [vmem:[#allocation7 + $0x1c0] ss:$8 sps:$4 sm:$0xff]  }
  0x86   :  { %1235 = vmatpush1.bf16.msra.mxu1 %v3025_v59  ;;  %v2934_v6 = vld [vmem:[#allocation7 + $0x1d4] ss:$8 sps:$4 sm:$0xff]   ;;  %v3034_v7 = vld [vmem:[#allocation8 + $0x40] ss:$8 sps:$4 sm:$0xff]   ;;  %v2932_v9 = vld [vmem:[#allocation7 + $0x1d0] ss:$8 sps:$4 sm:$0xff]  }
  0x87   :  { %1236 = vmatprep.subr.bf16.mxu1 %v3026_v60  ;;  %v3035_v8 = vld [vmem:[#allocation8 + $0x54] ss:$8 sps:$4 sm:$0xff]   ;;  %v2937_v10 = vld [vmem:[#allocation7 + $0x1e4] ss:$8 sps:$4 sm:$0xff]   ;;  %v3037_v11 = vld [vmem:[#allocation8 + $0x50] ss:$8 sps:$4 sm:$0xff]  }
  0x88   :  { %863 = vmatpush1.bf16.msra.mxu0 %v2862_v14  ;;  %v3038_v12 = vld [vmem:[#allocation8 + $0x64] ss:$8 sps:$4 sm:$0xff]   ;;  %v2935_v13 = vld [vmem:[#allocation7 + $0x1e0] ss:$8 sps:$4 sm:$0xff]   ;;  %v2940_v14 = vld [vmem:[#allocation7 + $0x1f4] ss:$8 sps:$4 sm:$0xff]  }
  0x89   :  { %864 = vmatprep.subr.bf16.mxu0 %v2863_v15  ;;  %v3040_v15 = vld [vmem:[#allocation8 + $0x60] ss:$8 sps:$4 sm:$0xff]   ;;  %v2983_v54 = vld [vmem:[#allocation7 + $0x2d0] ss:$8 sps:$4 sm:$0xff]   ;;  %v2988_v55 = vld [vmem:[#allocation7 + $0x2e4] ss:$8 sps:$4 sm:$0xff]  }
  0x8a   :  { %1237 = vmatpush1.bf16.msra.mxu1 %v3028_v0  ;;  %v2986_v56 = vld [vmem:[#allocation7 + $0x2e0] ss:$8 sps:$4 sm:$0xff]   ;;  %v2997_v59 = vld [vmem:[#allocation7 + $0x304] ss:$8 sps:$4 sm:$0xff]   ;;  %v3526_v0 = vmov 0  }
  0x8b   :  { %1238 = vmatprep.subr.bf16.mxu1 %v3029_v1  ;;  %v2992_v60 = vld [vmem:[#allocation2 + $0x10] ss:$28 sps:$4 sm:$0xff]  }
  0x8c   :  { %865 = vmatpush1.bf16.msra.mxu0 %v2865_v16  ;;  %v3041_v16 = vld [vmem:[#allocation8 + $0x74] ss:$8 sps:$4 sm:$0xff]   ;;  %v3003_v1 = vld [vmem:[#allocation7 + $0x324] ss:$8 sps:$4 sm:$0xff]  }
  0x8d   :  { %866 = vmatprep.subr.bf16.mxu0 %v2866_v17  ;;  %v2938_v17 = vld [vmem:[#allocation7 + $0x1f0] ss:$8 sps:$4 sm:$0xff]  }
  0x8e   :  { %1239 = vmatpush1.bf16.msra.mxu1 %v3031_v3  ;;  %v3006_v3 = vld [vmem:[#allocation7 + $0x334] ss:$8 sps:$4 sm:$0xff]  }
  0x8f   :  { %1240 = vmatprep.subr.bf16.mxu1 %v3032_v4  ;;  %v3004_v4 = vld [vmem:[#allocation7 + $0x330] ss:$8 sps:$4 sm:$0xff]  }
  0x90   :  { %867 = vmatpush1.bf16.msra.mxu0 %v2868_v18  ;;  %v2946_v18 = vld [vmem:[#allocation7 + $0x204] ss:$8 sps:$4 sm:$0xff]  }
  0x91   :  { %868 = vmatprep.subr.bf16.mxu0 %v2869_v19  ;;  %v3043_v19 = vld [vmem:[#allocation8 + $0x70] ss:$8 sps:$4 sm:$0xff]  }
  0x92   :  { %1241 = vmatpush1.bf16.msra.mxu1 %v3034_v7  ;;  %v3012_v7 = vld [vmem:[#allocation7 + $0x354] ss:$8 sps:$4 sm:$0xff]  }
  0x93   :  { %1242 = vmatprep.subr.bf16.mxu1 %v3035_v8  ;;  %v3010_v8 = vld [vmem:[#allocation7 + $0x350] ss:$8 sps:$4 sm:$0xff]  }
  0x94   :  { %869 = vmatpush1.bf16.msra.mxu0 %v2871_v20  ;;  %v2941_v20 = vld [vmem:[#allocation2 + $0x8] ss:$28 sps:$4 sm:$0xff]  }
  0x95   :  { %870 = vmatprep.subr.bf16.mxu0 %v2872_v21  ;;  %v3044_v21 = vld [vmem:[#allocation8 + $0x84] ss:$8 sps:$4 sm:$0xff]  }
  0x96   :  { %1243 = vmatpush1.bf16.msra.mxu1 %v3037_v11  ;;  %v3018_v11 = vld [vmem:[#allocation7 + $0x374] ss:$8 sps:$4 sm:$0xff]  }
  0x97   :  { %1244 = vmatprep.subr.bf16.mxu1 %v3038_v12  ;;  %v3016_v12 = vld [vmem:[#allocation7 + $0x370] ss:$8 sps:$4 sm:$0xff]  }
  0x98   :  { %871 = vmatpush1.bf16.msra.mxu0 %v2874_v22  ;;  %v2944_v22 = vld [vmem:[#allocation7 + $0x200] ss:$8 sps:$4 sm:$0xff]  }
  0x99   :  { %872 = vmatprep.subr.bf16.mxu0 %v2875_v23  ;;  %v2994_v23 = vld [vmem:[#allocation2 + $0x14] ss:$28 sps:$4 sm:$0xff]  }
  0x9a   :  { %1245 = vmatpush1.bf16.msra.mxu1 %v3040_v15  ;;  %v3055_v15 = vld [vmem:[#allocation8 + $0xb0] ss:$8 sps:$4 sm:$0xff]  }
  0x9b   :  { %1246 = vmatprep.subr.bf16.mxu1 %v3041_v16  ;;  %v3056_v16 = vld [vmem:[#allocation8 + $0xc4] ss:$8 sps:$4 sm:$0xff]  }
  0x9c   :  { %873 = vmatpush1.bf16.msra.mxu0 %v2877_v24  ;;  %v2949_v24 = vld [vmem:[#allocation7 + $0x214] ss:$8 sps:$4 sm:$0xff]  }
  0x9d   :  { %874 = vmatprep.subr.bf16.mxu0 %v2878_v25  ;;  %v3046_v25 = vld [vmem:[#allocation8 + $0x80] ss:$8 sps:$4 sm:$0xff]  }
  0x9e   :  { %1247 = vmatpush1.bf16.msra.mxu1 %v3043_v19  ;;  %v3061_v19 = vld [vmem:[#allocation8 + $0xd0] ss:$8 sps:$4 sm:$0xff]  }
  0x9f   :  { %1248 = vmatprep.subr.bf16.mxu1 %v3044_v21  ;;  %v3064_v21 = vld [vmem:[#allocation8 + $0xe0] ss:$8 sps:$4 sm:$0xff]  }
  0xa0   :  { %875 = vmatpush1.bf16.msra.mxu0 %v2880_v26  ;;  %v3047_v26 = vld [vmem:[#allocation8 + $0x94] ss:$8 sps:$4 sm:$0xff]  }
  0xa1   :  { %876 = vmatprep.subr.bf16.mxu0 %v2881_v27  ;;  %v2947_v27 = vld [vmem:[#allocation7 + $0x210] ss:$8 sps:$4 sm:$0xff]  }
  0xa2   :  { %1249 = vmatpush1.bf16.msra.mxu1 %v3046_v25  ;;  %v244_v25 = vlaneseq }
  0xa3   :  { %1250 = vmatprep.subr.bf16.mxu1 %v3047_v26 }
  0xa4   :  { %877 = vmatpush1.bf16.msra.mxu0 %v2883_v28  ;;  %v2952_v28 = vld [vmem:[#allocation7 + $0x224] ss:$8 sps:$4 sm:$0xff]   ;;  %v3684_v26 = vshrl.u32 %v244_v25, 7 }
  0xa5   :  { %878 = vmatprep.subr.bf16.mxu0 %v2884_v29  ;;  %v3049_v29 = vld [vmem:[#allocation8 + $0x90] ss:$8 sps:$4 sm:$0xff]  }
  0xa6   :  { %1251 = vmatpush1.bf16.msra.mxu1 %v3049_v29  ;;  %v3693_v29 = vsub.s32 1, %v3684_v26 }
  0xa8   :  { %879 = vmatpush1.bf16.msra.mxu0 %v2886_v30  ;;  %v3050_v30 = vld [vmem:[#allocation8 + $0xa4] ss:$8 sps:$4 sm:$0xff]  }
  0xa9   :  { %880 = vmatprep.subr.bf16.mxu0 %v2887_v31  ;;  %v2950_v31 = vld [vmem:[#allocation7 + $0x220] ss:$8 sps:$4 sm:$0xff]   ;;  %1252 = vmatprep.subr.bf16.mxu1 %v3050_v30 }
  0xac   :  { %881 = vmatpush1.bf16.msra.mxu0 %v2889_v32  ;;  %v2955_v32 = vld [vmem:[#allocation7 + $0x234] ss:$8 sps:$4 sm:$0xff]  }
  0xad   :  { %893 = vmatprep.subr.bf16.mxu0 %v2895_v33  ;;  %v3052_v33 = vld [vmem:[#allocation8 + $0xa0] ss:$8 sps:$4 sm:$0xff]  }
  0xae   :  { %1253 = vmatpush1.bf16.msra.mxu1 %v3052_v33 }
  0xaf   :  { %883 = vmatmul.mubr.bf16.vlgmr.msra.gmra.mrb[0].mxu0 %v2890_v34  ;;  %v2953_v34 = vld [vmem:[#allocation7 + $0x230] ss:$8 sps:$4 sm:$0xff]  }
  0xb0   :  { %894 = vmatpush1.bf16.msra.mxu0 %v2893_v35  ;;  %925 = vmatprep.mubr.bf16.mxu0 %v2943_v36  ;;  %v2958_v35 = vld [vmem:[#allocation7 + $0x244] ss:$8 sps:$4 sm:$0xff]   ;;  %v2956_v36 = vld [vmem:[#allocation7 + $0x240] ss:$8 sps:$4 sm:$0xff]  }
  0xb1   :  { %895 = vmatprep.subr.bf16.mxu0 %v2898_v37  ;;  %v2961_v37 = vld [vmem:[#allocation7 + $0x254] ss:$8 sps:$4 sm:$0xff]  }
  0xb4   :  { %896 = vmatpush1.bf16.msra.mxu0 %v2896_v38  ;;  %v2959_v38 = vld [vmem:[#allocation7 + $0x250] ss:$8 sps:$4 sm:$0xff]  }
  0xb5   :  { %897 = vmatprep.subr.bf16.mxu0 %v2901_v39  ;;  %v2964_v39 = vld [vmem:[#allocation7 + $0x264] ss:$8 sps:$4 sm:$0xff]  }
  0xb8   :  { %898 = vmatpush1.bf16.msra.mxu0 %v2899_v40  ;;  %v2962_v40 = vld [vmem:[#allocation7 + $0x260] ss:$8 sps:$4 sm:$0xff]  }
  0xb9   :  { %899 = vmatprep.subr.bf16.mxu0 %v2904_v41  ;;  %v2967_v41 = vld [vmem:[#allocation7 + $0x274] ss:$8 sps:$4 sm:$0xff]  }
  0xbc   :  { %900 = vmatpush1.bf16.msra.mxu0 %v2902_v42  ;;  %v2965_v42 = vld [vmem:[#allocation7 + $0x270] ss:$8 sps:$4 sm:$0xff]  }
  0xbd   :  { %901 = vmatprep.subr.bf16.mxu0 %v2907_v43  ;;  %v2970_v43 = vld [vmem:[#allocation7 + $0x284] ss:$8 sps:$4 sm:$0xff]  }
  0xc0   :  { %902 = vmatpush1.bf16.msra.mxu0 %v2905_v44  ;;  %v2968_v44 = vld [vmem:[#allocation7 + $0x280] ss:$8 sps:$4 sm:$0xff]  }
  0xc1   :  { %903 = vmatprep.subr.bf16.mxu0 %v2910_v45  ;;  %v2973_v45 = vld [vmem:[#allocation7 + $0x294] ss:$8 sps:$4 sm:$0xff]  }
  0xc4   :  { %904 = vmatpush1.bf16.msra.mxu0 %v2908_v46  ;;  %v2971_v46 = vld [vmem:[#allocation7 + $0x290] ss:$8 sps:$4 sm:$0xff]  }
  0xc5   :  { %905 = vmatprep.subr.bf16.mxu0 %v2913_v47  ;;  %v2976_v47 = vld [vmem:[#allocation7 + $0x2a4] ss:$8 sps:$4 sm:$0xff]  }
  0xc8   :  { %906 = vmatpush1.bf16.msra.mxu0 %v2911_v48  ;;  %v2974_v48 = vld [vmem:[#allocation7 + $0x2a0] ss:$8 sps:$4 sm:$0xff]  }
  0xc9   :  { %907 = vmatprep.subr.bf16.mxu0 %v2916_v49  ;;  %v2979_v49 = vld [vmem:[#allocation7 + $0x2b4] ss:$8 sps:$4 sm:$0xff]  }
  0xcc   :  { %908 = vmatpush1.bf16.msra.mxu0 %v2914_v50  ;;  %v2977_v50 = vld [vmem:[#allocation7 + $0x2b0] ss:$8 sps:$4 sm:$0xff]  }
  0xcd   :  { %909 = vmatprep.subr.bf16.mxu0 %v2919_v51  ;;  %v2982_v51 = vld [vmem:[#allocation7 + $0x2c4] ss:$8 sps:$4 sm:$0xff]  }
  0xd0   :  { %910 = vmatpush1.bf16.msra.mxu0 %v2917_v52  ;;  %v2980_v52 = vld [vmem:[#allocation7 + $0x2c0] ss:$8 sps:$4 sm:$0xff]  }
  0xd1   :  { %911 = vmatprep.subr.bf16.mxu0 %v2922_v53  ;;  %v2985_v53 = vld [vmem:[#allocation7 + $0x2d4] ss:$8 sps:$4 sm:$0xff]  }
  0xd4   :  { %912 = vmatpush1.bf16.msra.mxu0 %v2920_v57  ;;  %v2991_v57 = vld [vmem:[#allocation7 + $0x2f4] ss:$8 sps:$4 sm:$0xff]  }
  0xd5   :  { %913 = vmatprep.subr.bf16.mxu0 %v2925_v58  ;;  %v2989_v58 = vld [vmem:[#allocation7 + $0x2f0] ss:$8 sps:$4 sm:$0xff]  }
  0xd8   :  { %914 = vmatpush1.bf16.msra.mxu0 %v2923_v61  ;;  %v2995_v61 = vld [vmem:[#allocation7 + $0x300] ss:$8 sps:$4 sm:$0xff]  }
  0xd9   :  { %915 = vmatprep.subr.bf16.mxu0 %v2928_v62  ;;  %v3000_v62 = vld [vmem:[#allocation7 + $0x314] ss:$8 sps:$4 sm:$0xff]  }
  0xdc   :  { %916 = vmatpush1.bf16.msra.mxu0 %v2926_v63  ;;  %v2998_v63 = vld [vmem:[#allocation7 + $0x310] ss:$8 sps:$4 sm:$0xff]  }
  0xdd   :  { %917 = vmatprep.subr.bf16.mxu0 %v2931_v2  ;;  %v3001_v2 = vld [vmem:[#allocation7 + $0x320] ss:$8 sps:$4 sm:$0xff]  }
  0xe0   :  { %918 = vmatpush1.bf16.msra.mxu0 %v2929_v5  ;;  %v3009_v5 = vld [vmem:[#allocation7 + $0x344] ss:$8 sps:$4 sm:$0xff]  }
  0xe1   :  { %919 = vmatprep.subr.bf16.mxu0 %v2934_v6  ;;  %v3007_v6 = vld [vmem:[#allocation7 + $0x340] ss:$8 sps:$4 sm:$0xff]  }
  0xe4   :  { %920 = vmatpush1.bf16.msra.mxu0 %v2932_v9  ;;  %v3015_v9 = vld [vmem:[#allocation7 + $0x364] ss:$8 sps:$4 sm:$0xff]  }
  0xe5   :  { %921 = vmatprep.subr.bf16.mxu0 %v2937_v10  ;;  %v3013_v10 = vld [vmem:[#allocation7 + $0x360] ss:$8 sps:$4 sm:$0xff]  }
  0xe8   :  { %922 = vmatpush1.bf16.msra.mxu0 %v2935_v13  ;;  %v3019_v13 = vld [vmem:[#allocation2 + $0x18] ss:$28 sps:$4 sm:$0xff]  }
  0xe9   :  { %923 = vmatprep.subr.bf16.mxu0 %v2940_v14  ;;  %v3053_v14 = vld [vmem:[#allocation8 + $0xb4] ss:$8 sps:$4 sm:$0xff]  }
  0xea   :  { %1254 = vmatprep.subr.bf16.mxu1 %v3053_v14  ;;  %v3143_v14 = vld [vmem:[#allocation11 + $0x1d0] ss:$28 sps:$4 sm:$0xff]  }
  0xeb   :  { %1255 = vmatpush1.bf16.msra.mxu1 %v3055_v15  ;;  %v3145_v15 = vld [vmem:[#allocation11 + $0x1d4] ss:$28 sps:$4 sm:$0xff]  }
  0xec   :  { %924 = vmatpush1.bf16.msra.mxu0 %v2938_v17  ;;  %v3058_v17 = vld [vmem:[#allocation8 + $0xc0] ss:$8 sps:$4 sm:$0xff]   ;;  %1256 = vmatprep.subr.bf16.mxu1 %v3056_v16 }
  0xed   :  { %936 = vmatprep.subr.bf16.mxu0 %v2946_v18  ;;  %v3059_v18 = vld [vmem:[#allocation8 + $0xd4] ss:$8 sps:$4 sm:$0xff]   ;;  %v3149_v16 = vld [vmem:[#allocation11 + $0x208] ss:$28 sps:$4 sm:$0xff]  }
  0xef   :  { %926 = vmatmul.mubr.bf16.vlgmr.msra.gmra.mrb[0].mxu0 %v2941_v20  ;;  %1257 = vmatpush1.bf16.msra.mxu1 %v3058_v17  ;;  %v3062_v20 = vld [vmem:[#allocation8 + $0xe4] ss:$8 sps:$4 sm:$0xff]  }
  0xf0   :  { %937 = vmatpush1.bf16.msra.mxu0 %v2944_v22  ;;  %968 = vmatprep.mubr.bf16.mxu0 %v2994_v23  ;;  %v3065_v22 = vld [vmem:[#allocation8 + $0xf4] ss:$8 sps:$4 sm:$0xff]   ;;  %v3067_v23 = vld [vmem:[#allocation8 + $0xf0] ss:$8 sps:$4 sm:$0xff]   ;;  %v3151_v17 = vld [vmem:[#allocation11 + $0x20c] ss:$28 sps:$4 sm:$0xff]  }
  0xf1   :  { %938 = vmatprep.subr.bf16.mxu0 %v2949_v24  ;;  %1258 = vmatprep.subr.bf16.mxu1 %v3059_v18  ;;  %v3070_v24 = vld [vmem:[#allocation10 + $0x4] ss:$8 sps:$4 sm:$0xff]   ;;  %v3155_v18 = vld [vmem:[#allocation11 + $0x240] ss:$28 sps:$4 sm:$0xff]  }
  0xf3   :  { %1259 = vmatpush1.bf16.msra.mxu1 %v3061_v19  ;;  %v3157_v19 = vld [vmem:[#allocation11 + $0x244] ss:$28 sps:$4 sm:$0xff]  }
  0xf4   :  { %939 = vmatpush1.bf16.msra.mxu0 %v2947_v27  ;;  %1260 = vmatprep.subr.bf16.mxu1 %v3062_v20  ;;  %v3687_v27 = vsub.s32 0, %v3684_v26  ;;  %v1060_v20 = vld [vmem:[%s3768_s5] sm:$0x3] }
  0xf5   :  { %940 = vmatprep.subr.bf16.mxu0 %v2952_v28  ;;  %v242_v28 = vld [vmem:[%s3766_s3] sm:$0x3] }
  0xf6   :  { %v247_v30 = vrot.slane %v242_v28, %v3687_v27 }
  0xf7   :  { %1261 = vmatpush1.bf16.msra.mxu1 %v3064_v21  ;;  %v1065_v21 = vrot.slane %v1060_v20, %v3687_v27 }
  0xf8   :  { %941 = vmatpush1.bf16.msra.mxu0 %v2950_v31  ;;  %1262 = vmatprep.subr.bf16.mxu1 %v3065_v22  ;;  %v251_v31 = vrot.slane %v242_v28, %v3693_v29  ;;  %v1069_v22 = vrot.slane %v1060_v20, %v3693_v29  ;;  %v3184_v20 = vld [vmem:[#allocation11 + $0x34c] ss:$28 sps:$4 sm:$0xff]  }
  0xf9   :  { %942 = vmatprep.subr.bf16.mxu0 %v2955_v32 }
  0xfb   :  { %1263 = vmatpush1.bf16.msra.mxu1 %v3067_v23 }
  0xfc   :  { %943 = vmatpush1.bf16.msra.mxu0 %v2953_v34  ;;  %1396 = vmatprep.subr.bf16.mxu1 %v3070_v24 }
  0xfd   :  { %944 = vmatprep.subr.bf16.mxu0 %v2958_v35 }
 0x100   :  { %945 = vmatpush1.bf16.msra.mxu0 %v2956_v36 }
 0x101   :  { %946 = vmatprep.subr.bf16.mxu0 %v2961_v37 }
 0x104   :  { %947 = vmatpush1.bf16.msra.mxu0 %v2959_v38 }
 0x105   :  { %948 = vmatprep.subr.bf16.mxu0 %v2964_v39 }
 0x108   :  { %949 = vmatpush1.bf16.msra.mxu0 %v2962_v40 }
 0x109   :  { %950 = vmatprep.subr.bf16.mxu0 %v2967_v41 }
 0x10c   :  { %951 = vmatpush1.bf16.msra.mxu0 %v2965_v42 }
 0x10d   :  { %952 = vmatprep.subr.bf16.mxu0 %v2970_v43 }
 0x110   :  { %953 = vmatpush1.bf16.msra.mxu0 %v2968_v44 }
 0x111   :  { %954 = vmatprep.subr.bf16.mxu0 %v2973_v45 }
 0x114   :  { %955 = vmatpush1.bf16.msra.mxu0 %v2971_v46  ;;  %v3068_v46 = vld [vmem:[#allocation10] ss:$8 sps:$4 sm:$0xff]  }
 0x115   :  { %956 = vmatprep.subr.bf16.mxu0 %v2976_v47  ;;  %v3073_v47 = vld [vmem:[#allocation10 + $0x14] ss:$8 sps:$4 sm:$0xff]  }
 0x118   :  { %957 = vmatpush1.bf16.msra.mxu0 %v2974_v48  ;;  %v3071_v48 = vld [vmem:[#allocation10 + $0x10] ss:$8 sps:$4 sm:$0xff]  }
 0x119   :  { %958 = vmatprep.subr.bf16.mxu0 %v2979_v49  ;;  %v3076_v49 = vld [vmem:[#allocation10 + $0x24] ss:$8 sps:$4 sm:$0xff]  }
 0x11c   :  { %959 = vmatpush1.bf16.msra.mxu0 %v2977_v50  ;;  %v3074_v50 = vld [vmem:[#allocation10 + $0x20] ss:$8 sps:$4 sm:$0xff]  }
 0x11d   :  { %960 = vmatprep.subr.bf16.mxu0 %v2982_v51  ;;  %v3079_v51 = vld [vmem:[#allocation10 + $0x34] ss:$8 sps:$4 sm:$0xff]  }
 0x120   :  { %961 = vmatpush1.bf16.msra.mxu0 %v2980_v52  ;;  %v3077_v52 = vld [vmem:[#allocation10 + $0x30] ss:$8 sps:$4 sm:$0xff]  }
 0x121   :  { %962 = vmatprep.subr.bf16.mxu0 %v2985_v53  ;;  %v3082_v53 = vld [vmem:[#allocation10 + $0x44] ss:$8 sps:$4 sm:$0xff]  }
 0x124   :  { %963 = vmatpush1.bf16.msra.mxu0 %v2983_v54  ;;  %v3080_v54 = vld [vmem:[#allocation10 + $0x40] ss:$8 sps:$4 sm:$0xff]  }
 0x125   :  { %964 = vmatprep.subr.bf16.mxu0 %v2988_v55  ;;  %v3085_v55 = vld [vmem:[#allocation10 + $0x54] ss:$8 sps:$4 sm:$0xff]  }
 0x128   :  { %965 = vmatpush1.bf16.msra.mxu0 %v2986_v56  ;;  %v3083_v56 = vld [vmem:[#allocation10 + $0x50] ss:$8 sps:$4 sm:$0xff]  }
 0x129   :  { %966 = vmatprep.subr.bf16.mxu0 %v2991_v57  ;;  %v3088_v57 = vld [vmem:[#allocation10 + $0x64] ss:$8 sps:$4 sm:$0xff]  }
 0x12c   :  { %967 = vmatpush1.bf16.msra.mxu0 %v2989_v58  ;;  %v3086_v58 = vld [vmem:[#allocation10 + $0x60] ss:$8 sps:$4 sm:$0xff]  }
 0x12d   :  { %979 = vmatprep.subr.bf16.mxu0 %v2997_v59  ;;  %v3091_v59 = vld [vmem:[#allocation10 + $0x74] ss:$8 sps:$4 sm:$0xff]  }
 0x12f   :  { %969 = vmatmul.mubr.bf16.vlgmr.msra.gmra.mrb[0].mxu0 %v2992_v60  ;;  %v3089_v60 = vld [vmem:[#allocation10 + $0x70] ss:$8 sps:$4 sm:$0xff]  }
 0x130   :  { %980 = vmatpush1.bf16.msra.mxu0 %v2995_v61  ;;  %1011 = vmatprep.mubr.bf16.mxu0 %v3526_v0  ;;  %v3094_v61 = vld [vmem:[#allocation11 + $0x4] ss:$28 sps:$4 sm:$0xff]  }
 0x131   :  { %981 = vmatprep.subr.bf16.mxu0 %v3000_v62  ;;  %v3095_v62 = vld [vmem:[#allocation11 + $0x10] ss:$28 sps:$4 sm:$0xff]  }
 0x134   :  { %982 = vmatpush1.bf16.msra.mxu0 %v2998_v63  ;;  %v3097_v63 = vld [vmem:[#allocation11 + $0x14] ss:$28 sps:$4 sm:$0xff]  }
 0x135   :  { %983 = vmatprep.subr.bf16.mxu0 %v3003_v1  ;;  %v3103_v1 = vld [vmem:[#allocation11 + $0x4c] ss:$28 sps:$4 sm:$0xff]  }
 0x138   :  { %984 = vmatpush1.bf16.msra.mxu0 %v3001_v2  ;;  %v3107_v2 = vld [vmem:[#allocation11 + $0x80] ss:$28 sps:$4 sm:$0xff]  }
 0x139   :  { %985 = vmatprep.subr.bf16.mxu0 %v3006_v3  ;;  %v3109_v3 = vld [vmem:[#allocation11 + $0x84] ss:$28 sps:$4 sm:$0xff]  }
 0x13c   :  { %986 = vmatpush1.bf16.msra.mxu0 %v3004_v4  ;;  %v3113_v4 = vld [vmem:[#allocation11 + $0xb8] ss:$28 sps:$4 sm:$0xff]  }
 0x13d   :  { %987 = vmatprep.subr.bf16.mxu0 %v3009_v5  ;;  %v3115_v5 = vld [vmem:[#allocation11 + $0xbc] ss:$28 sps:$4 sm:$0xff]  }
 0x140   :  { %988 = vmatpush1.bf16.msra.mxu0 %v3007_v6  ;;  %v3119_v6 = vld [vmem:[#allocation11 + $0xf0] ss:$28 sps:$4 sm:$0xff]  }
 0x141   :  { %989 = vmatprep.subr.bf16.mxu0 %v3012_v7  ;;  %v3121_v7 = vld [vmem:[#allocation11 + $0xf4] ss:$28 sps:$4 sm:$0xff]  }
 0x144   :  { %990 = vmatpush1.bf16.msra.mxu0 %v3010_v8  ;;  %v3125_v8 = vld [vmem:[#allocation11 + $0x128] ss:$28 sps:$4 sm:$0xff]  }
 0x145   :  { %991 = vmatprep.subr.bf16.mxu0 %v3015_v9  ;;  %v3127_v9 = vld [vmem:[#allocation11 + $0x12c] ss:$28 sps:$4 sm:$0xff]  }
 0x148   :  { %992 = vmatpush1.bf16.msra.mxu0 %v3013_v10  ;;  %v3131_v10 = vld [vmem:[#allocation11 + $0x160] ss:$28 sps:$4 sm:$0xff]  }
 0x149   :  { %993 = vmatprep.subr.bf16.mxu0 %v3018_v11  ;;  %v3133_v11 = vld [vmem:[#allocation11 + $0x164] ss:$28 sps:$4 sm:$0xff]  }
 0x14c   :  { %994 = vmatpush1.bf16.msra.mxu0 %v3016_v12  ;;  %v3137_v12 = vld [vmem:[#allocation11 + $0x198] ss:$28 sps:$4 sm:$0xff]  }
 0x14d   :  { %2272 = vmatprep.subr.bf16.mxu0 %v3097_v63  ;;  %v3140_v63 = vld [vmem:[#allocation11 + $0x1c0] ss:$28 sps:$4 sm:$0xff]  }
 0x14f   :  { %1012 = vmatmul.mubr.bf16.vlgmr.msra.gmra.mrb[0].mxu0 %v3019_v13  ;;  %v3139_v13 = vld [vmem:[#allocation11 + $0x19c] ss:$28 sps:$4 sm:$0xff]  }
 0x150   :  { %2273 = vmatpush1.bf16.msra.mxu0 %v3095_v62  ;;  %v3142_v62 = vld [vmem:[#allocation11 + $0x1c4] ss:$28 sps:$4 sm:$0xff]  }
 0x151   :  { %2274 = vmatprep.subr.bf16.mxu0 %v3103_v1  ;;  %v3146_v1 = vld [vmem:[#allocation11 + $0x1f8] ss:$28 sps:$4 sm:$0xff]  }
 0x222   :  { %v1013_v32 = vpop.f32.mrb[0].mxu0 }
 0x223   :  { %v2809_v33 = vadd.f32 %v1013_v32, %v247_v30  ;;  %v1015_v34 = vpop.f32.mrb[1].mxu0 }
 0x224   :  { %v2810_v35 = vadd.f32 %v1015_v34, %v251_v31  ;;  %v1017_v36 = vpop.f32.mrb[2].mxu0 }
 0x225   :  { %3252 = vtanh.f32 %v2809_v33  ;;  %v2811_v37 = vadd.f32 %v1017_v36, %v247_v30  ;;  %v1019_v38 = vpop.f32.mrb[3].mxu0 }
 0x226   :  { %3254 = vtanh.f32 %v2810_v35  ;;  %v2812_v39 = vadd.f32 %v1019_v38, %v251_v31  ;;  %v1275_v38 = vld [vmem:[#allocation5] sm:$0xff] }
 0x227   :  { %3256 = vtanh.f32 %v2811_v37 }
 0x228   :  { %3258 = vtanh.f32 %v2812_v39 }
 0x22f   :  { %v3253_v40 = vpop.eup %3252 }
 0x230   :  { %v3255_v41 = vpop.eup %3254 }
 0x231   :  { %v3257_v42 = vpop.eup %3256 }
 0x232   :  { %v3259_v43 = vpop.eup %3258  ;;  %v1026_v44 = vpack.c.bf16 %v3257_v42, %v3253_v40  ;;  %v1276_v40 = vld [vmem:[#allocation5 + $0x8] sm:$0xff] }
 0x233   :  { %v1027_v45 = vpack.c.bf16 %v3259_v43, %v3255_v41 }
 0x235   :  { %1264 = vmatprep.mubr.bf16.mxu1 %v1027_v45 }
 0x236   :  { %1265 = vmatmul.mubr.bf16.vlgmr.msra.gmra.mrb[0].mxu1 %v1026_v44 }
 0x237   :  { %1397 = vmatpush1.bf16.msra.mxu1 %v3068_v46  ;;  %1428 = vmatprep.mubr.bf16.mxu1 %v3526_v0  ;;  %v3101_v0 = vld [vmem:[#allocation11 + $0x48] ss:$28 sps:$4 sm:$0xff]   ;;  %v3092_v46 = vld [vmem:[#allocation11] ss:$28 sps:$4 sm:$0xff]  }
 0x238   :  { %1398 = vmatprep.subr.bf16.mxu1 %v3073_v47  ;;  %2275 = vmatpush1.bf16.msra.mxu0 %v3101_v0  ;;  %v3148_v0 = vld [vmem:[#allocation11 + $0x1fc] ss:$28 sps:$4 sm:$0xff]  }
 0x239   :  { %2276 = vmatprep.subr.bf16.mxu0 %v3109_v3  ;;  %v3152_v3 = vld [vmem:[#allocation11 + $0x230] ss:$28 sps:$4 sm:$0xff]  }
 0x23b   :  { %1399 = vmatpush1.bf16.msra.mxu1 %v3071_v48  ;;  %v3100_v48 = vld [vmem:[#allocation11 + $0x3c] ss:$28 sps:$4 sm:$0xff]  }
 0x23c   :  { %1400 = vmatprep.subr.bf16.mxu1 %v3076_v49  ;;  %2277 = vmatpush1.bf16.msra.mxu0 %v3107_v2  ;;  %v3098_v49 = vld [vmem:[#allocation11 + $0x38] ss:$28 sps:$4 sm:$0xff]  }
 0x23d   :  { %2278 = vmatprep.subr.bf16.mxu0 %v3115_v5  ;;  %v3154_v2 = vld [vmem:[#allocation11 + $0x234] ss:$28 sps:$4 sm:$0xff]   ;;  %v3158_v5 = vld [vmem:[#allocation11 + $0x268] ss:$28 sps:$4 sm:$0xff]  }
 0x23f   :  { %1401 = vmatpush1.bf16.msra.mxu1 %v3074_v50  ;;  %v3106_v50 = vld [vmem:[#allocation11 + $0x74] ss:$28 sps:$4 sm:$0xff]  }
 0x240   :  { %1402 = vmatprep.subr.bf16.mxu1 %v3079_v51  ;;  %2279 = vmatpush1.bf16.msra.mxu0 %v3113_v4  ;;  %v3104_v51 = vld [vmem:[#allocation11 + $0x70] ss:$28 sps:$4 sm:$0xff]  }
 0x241   :  { %2280 = vmatprep.subr.bf16.mxu0 %v3121_v7  ;;  %v3160_v4 = vld [vmem:[#allocation11 + $0x26c] ss:$28 sps:$4 sm:$0xff]   ;;  %v3161_v7 = vld [vmem:[#allocation11 + $0x278] ss:$28 sps:$4 sm:$0xff]  }
 0x243   :  { %1403 = vmatpush1.bf16.msra.mxu1 %v3077_v52  ;;  %v3112_v52 = vld [vmem:[#allocation11 + $0xac] ss:$28 sps:$4 sm:$0xff]  }
 0x244   :  { %1404 = vmatprep.subr.bf16.mxu1 %v3082_v53  ;;  %2281 = vmatpush1.bf16.msra.mxu0 %v3119_v6  ;;  %v3110_v53 = vld [vmem:[#allocation11 + $0xa8] ss:$28 sps:$4 sm:$0xff]   ;;  %v3163_v6 = vld [vmem:[#allocation11 + $0x27c] ss:$28 sps:$4 sm:$0xff]  }
 0x245   :  { %2282 = vmatprep.subr.bf16.mxu0 %v3127_v9  ;;  %v3164_v9 = vld [vmem:[#allocation11 + $0x2a0] ss:$28 sps:$4 sm:$0xff]  }
 0x247   :  { %1405 = vmatpush1.bf16.msra.mxu1 %v3080_v54  ;;  %v3118_v54 = vld [vmem:[#allocation11 + $0xe4] ss:$28 sps:$4 sm:$0xff]  }
 0x248   :  { %1406 = vmatprep.subr.bf16.mxu1 %v3085_v55  ;;  %2283 = vmatpush1.bf16.msra.mxu0 %v3125_v8  ;;  %v3116_v55 = vld [vmem:[#allocation11 + $0xe0] ss:$28 sps:$4 sm:$0xff]  }
 0x249   :  { %2284 = vmatprep.subr.bf16.mxu0 %v3133_v11  ;;  %v3166_v8 = vld [vmem:[#allocation11 + $0x2a4] ss:$28 sps:$4 sm:$0xff]   ;;  %v3167_v11 = vld [vmem:[#allocation11 + $0x2b0] ss:$28 sps:$4 sm:$0xff]  }
 0x24b   :  { %1407 = vmatpush1.bf16.msra.mxu1 %v3083_v56  ;;  %v3124_v56 = vld [vmem:[#allocation11 + $0x11c] ss:$28 sps:$4 sm:$0xff]  }
 0x24c   :  { %1408 = vmatprep.subr.bf16.mxu1 %v3088_v57  ;;  %2285 = vmatpush1.bf16.msra.mxu0 %v3131_v10  ;;  %v3122_v57 = vld [vmem:[#allocation11 + $0x118] ss:$28 sps:$4 sm:$0xff]  }
 0x24d   :  { %2286 = vmatprep.subr.bf16.mxu0 %v3139_v13  ;;  %v3169_v10 = vld [vmem:[#allocation11 + $0x2b4] ss:$28 sps:$4 sm:$0xff]  }
 0x24e   :  { %v3170_v13 = vld [vmem:[#allocation11 + $0x2d8] ss:$28 sps:$4 sm:$0xff]  }
 0x24f   :  { %1409 = vmatpush1.bf16.msra.mxu1 %v3086_v58  ;;  %v3130_v58 = vld [vmem:[#allocation11 + $0x154] ss:$28 sps:$4 sm:$0xff]  }
 0x250   :  { %1410 = vmatprep.subr.bf16.mxu1 %v3091_v59  ;;  %2287 = vmatpush1.bf16.msra.mxu0 %v3137_v12  ;;  %v3128_v59 = vld [vmem:[#allocation11 + $0x150] ss:$28 sps:$4 sm:$0xff]   ;;  %v3172_v12 = vld [vmem:[#allocation11 + $0x2dc] ss:$28 sps:$4 sm:$0xff]  }
 0x251   :  { %2288 = vmatprep.subr.bf16.mxu0 %v3145_v15  ;;  %v3175_v15 = vld [vmem:[#allocation11 + $0x2ec] ss:$28 sps:$4 sm:$0xff]  }
 0x253   :  { %1411 = vmatpush1.bf16.msra.mxu1 %v3089_v60  ;;  %v3136_v60 = vld [vmem:[#allocation11 + $0x18c] ss:$28 sps:$4 sm:$0xff]  }
 0x254   :  { %2186 = vmatprep.subr.bf16.mxu1 %v3094_v61  ;;  %2289 = vmatpush1.bf16.msra.mxu0 %v3143_v14  ;;  %v3134_v61 = vld [vmem:[#allocation11 + $0x188] ss:$28 sps:$4 sm:$0xff]  }
 0x255   :  { %2290 = vmatprep.subr.bf16.mxu0 %v3151_v17  ;;  %v3173_v14 = vld [vmem:[#allocation11 + $0x2e8] ss:$28 sps:$4 sm:$0xff]   ;;  %v3176_v17 = vld [vmem:[#allocation11 + $0x310] ss:$28 sps:$4 sm:$0xff]  }
 0x258   :  { %2291 = vmatpush1.bf16.msra.mxu0 %v3149_v16  ;;  %v3178_v16 = vld [vmem:[#allocation11 + $0x314] ss:$28 sps:$4 sm:$0xff]  }
 0x259   :  { %2292 = vmatprep.subr.bf16.mxu0 %v3157_v19  ;;  %v3179_v19 = vld [vmem:[#allocation11 + $0x320] ss:$28 sps:$4 sm:$0xff]  }
 0x25c   :  { %2293 = vmatpush1.bf16.msra.mxu0 %v3155_v18  ;;  %v3181_v18 = vld [vmem:[#allocation11 + $0x324] ss:$28 sps:$4 sm:$0xff]  }
 0x25d   :  { %2294 = vmatprep.subr.bf16.mxu0 %v3163_v6  ;;  %v3229_v6 = vld [vmem:[#allocation11 + $0x2e4] ss:$28 sps:$4 sm:$0xff]  }
 0x260   :  { %2295 = vmatpush1.bf16.msra.mxu0 %v3161_v7  ;;  %v3227_v7 = vld [vmem:[#allocation11 + $0x2e0] ss:$28 sps:$4 sm:$0xff]  }
 0x261   :  { %2296 = vmatprep.subr.bf16.mxu0 %v3169_v10  ;;  %v3235_v10 = vld [vmem:[#allocation11 + $0x354] ss:$28 sps:$4 sm:$0xff]  }
 0x264   :  { %2297 = vmatpush1.bf16.msra.mxu0 %v3167_v11  ;;  %v3233_v11 = vld [vmem:[#allocation11 + $0x350] ss:$28 sps:$4 sm:$0xff]  }
 0x265   :  { %2298 = vmatprep.subr.bf16.mxu0 %v3175_v15  ;;  %v3239_v15 = vld [vmem:[#allocation11 + $0x50] ss:$28 sps:$4 sm:$0xff]  }
 0x268   :  { %2299 = vmatpush1.bf16.msra.mxu0 %v3173_v14  ;;  %v3238_v14 = vld [vmem:[#allocation11 + $0x210] ss:$28 sps:$4 sm:$0xff]  }
 0x269   :  { %2300 = vmatprep.subr.bf16.mxu0 %v3181_v18  ;;  %v3242_v18 = vld [vmem:[#allocation11 + $0x280] ss:$28 sps:$4 sm:$0xff]  }
 0x26c   :  { %2301 = vmatpush1.bf16.msra.mxu0 %v3179_v19  ;;  %v3243_v19 = vld [vmem:[#allocation11 + $0xc0] ss:$28 sps:$4 sm:$0xff]  }
 0x309   :  { %v1266_v23 = vpop.f32.mrb[0].mxu1 }
 0x30a   :  { %v1267_v24 = vadd.f32 %v1266_v23, %v1065_v21  ;;  %v1268_v25 = vpop.f32.mrb[1].mxu1  ;;  %v3185_v23 = vld [vmem:[#allocation11 + $0x358] ss:$28 sps:$4 sm:$0xff]  }
 0x30b   :  { %v1269_v28 = vadd.f32 %v1268_v25, %v1069_v22  ;;  %v1270_v30 = vpop.f32.mrb[2].mxu1  ;;  %v1304_v25 = vld [vmem:[%s3770_s7] sm:$0x3] }
 0x30c   :  { %2454 = vst [vmem:[#allocation14] sm:$0xff] %v1267_v24  ;;  %v1271_v31 = vadd.f32 %v1270_v30, %v1065_v21  ;;  %v1272_v32 = vpop.f32.mrb[3].mxu1  ;;  %v3187_v21 = vld [vmem:[#allocation11 + $0x35c] ss:$28 sps:$4 sm:$0xff]   ;;  %v1313_v30 = vrot.slane %v1304_v25, %v3693_v29 }
 0x30d   :  { %v1277_v33 = vmul.f32 0.5, %v1269_v28  ;;  %2455 = vst [vmem:[#allocation14 + $0x8] sm:$0xff] %v1269_v28  ;;  %v1273_v34 = vadd.f32 %v1272_v32, %v1069_v22  ;;  %v3182_v22 = vld [vmem:[#allocation11 + $0x348] ss:$28 sps:$4 sm:$0xff]   ;;  %2302 = vmatprep.subr.bf16.mxu0 %v3187_v21  ;;  %v1309_v28 = vrot.slane %v1304_v25, %v3687_v27  ;;  %v3245_v21 = vld [vmem:[#allocation11 + $0xf8] ss:$28 sps:$4 sm:$0xff]  }
 0x30e   :  { %2456 = vst [vmem:[#allocation14 + $0x10] sm:$0xff] %v1271_v31  ;;  %2303 = vmatpush1.bf16.msra.mxu0 %v3185_v23  ;;  %v3247_v23 = vld [vmem:[#allocation11 + $0x130] ss:$28 sps:$4 sm:$0xff]   ;;  %v3249_v25 = vld [vmem:[#allocation11 + $0x168] ss:$28 sps:$4 sm:$0xff]  }
 0x30f   :  { %v1279_v35 = vmul.f32 1.442695, %v1277_v33  ;;  %v1278_v36 = vmul.f32 0.5, %v1273_v34  ;;  %2457 = vst [vmem:[#allocation14 + $0x18] sm:$0xff] %v1273_v34 }
 0x311   :  { %3260 = vpow2.f32 %v1279_v35  ;;  %v1281_v37 = vmul.f32 1.442695, %v1278_v36 }
 0x313   :  { %3262 = vpow2.f32 %v1281_v37 }
 0x31b   :  { %v3261_v39 = vpop.eup %3260 }
 0x31c   :  { %v1283_v41 = vmul.f32 %v3261_v39, %v1275_v38 }
 0x31d   :  { %v3263_v42 = vpop.eup %3262 }
 0x31e   :  { %v1284_v43 = vmul.f32 %v3263_v42, %v1276_v40  ;;  %v1285_v44 = vadd.f32 %v1283_v41, %v1267_v24  ;;  %v3190_v24 = vld [vmem:[#allocation11 + $0xc] ss:$28 sps:$4 sm:$0xff]  }
 0x320   :  { %v1286_v45 = vadd.f32 %v1284_v43, %v1271_v31 }
 0x322   :  { %v1287_v47 = vpack.c.bf16 %v1286_v45, %v1285_v44  ;;  %v3188_v45 = vld [vmem:[#allocation11 + $0x8] ss:$28 sps:$4 sm:$0xff]  }
 0x324   :  { %1429 = vmatmul.mubr.bf16.vlgmr.msra.gmra.mrb[4].mxu1 %v1287_v47  ;;  %v3191_v47 = vld [vmem:[#allocation11 + $0x40] ss:$28 sps:$4 sm:$0xff]  }
 0x325   :  { %2187 = vmatpush1.bf16.msra.mxu1 %v3092_v46  ;;  %v3193_v46 = vld [vmem:[#allocation11 + $0x44] ss:$28 sps:$4 sm:$0xff]  }
 0x326   :  { %2188 = vmatprep.subr.bf16.mxu1 %v3100_v48  ;;  %v3196_v48 = vld [vmem:[#allocation11 + $0x7c] ss:$28 sps:$4 sm:$0xff]  }
 0x329   :  { %2189 = vmatpush1.bf16.msra.mxu1 %v3098_v49  ;;  %v3194_v49 = vld [vmem:[#allocation11 + $0x78] ss:$28 sps:$4 sm:$0xff]  }
 0x32a   :  { %2190 = vmatprep.subr.bf16.mxu1 %v3106_v50  ;;  %v3199_v50 = vld [vmem:[#allocation11 + $0xb4] ss:$28 sps:$4 sm:$0xff]  }
 0x32d   :  { %2191 = vmatpush1.bf16.msra.mxu1 %v3104_v51  ;;  %v3197_v51 = vld [vmem:[#allocation11 + $0xb0] ss:$28 sps:$4 sm:$0xff]  }
 0x32e   :  { %2192 = vmatprep.subr.bf16.mxu1 %v3112_v52  ;;  %v3202_v52 = vld [vmem:[#allocation11 + $0xec] ss:$28 sps:$4 sm:$0xff]  }
 0x331   :  { %2193 = vmatpush1.bf16.msra.mxu1 %v3110_v53  ;;  %v3200_v53 = vld [vmem:[#allocation11 + $0xe8] ss:$28 sps:$4 sm:$0xff]  }
 0x332   :  { %2194 = vmatprep.subr.bf16.mxu1 %v3118_v54  ;;  %v3205_v54 = vld [vmem:[#allocation11 + $0x124] ss:$28 sps:$4 sm:$0xff]  }
 0x335   :  { %2195 = vmatpush1.bf16.msra.mxu1 %v3116_v55  ;;  %v3203_v55 = vld [vmem:[#allocation11 + $0x120] ss:$28 sps:$4 sm:$0xff]  }
 0x336   :  { %2196 = vmatprep.subr.bf16.mxu1 %v3124_v56  ;;  %v3208_v56 = vld [vmem:[#allocation11 + $0x15c] ss:$28 sps:$4 sm:$0xff]  }
 0x339   :  { %2197 = vmatpush1.bf16.msra.mxu1 %v3122_v57  ;;  %v3206_v57 = vld [vmem:[#allocation11 + $0x158] ss:$28 sps:$4 sm:$0xff]  }
 0x33a   :  { %2198 = vmatprep.subr.bf16.mxu1 %v3130_v58  ;;  %v3211_v58 = vld [vmem:[#allocation11 + $0x194] ss:$28 sps:$4 sm:$0xff]  }
 0x33d   :  { %2199 = vmatpush1.bf16.msra.mxu1 %v3128_v59  ;;  %v3209_v59 = vld [vmem:[#allocation11 + $0x190] ss:$28 sps:$4 sm:$0xff]  }
 0x33e   :  { %2200 = vmatprep.subr.bf16.mxu1 %v3136_v60  ;;  %v3214_v60 = vld [vmem:[#allocation11 + $0x1cc] ss:$28 sps:$4 sm:$0xff]  }
 0x341   :  { %2201 = vmatpush1.bf16.msra.mxu1 %v3134_v61  ;;  %v3212_v61 = vld [vmem:[#allocation11 + $0x1c8] ss:$28 sps:$4 sm:$0xff]  }
 0x342   :  { %2202 = vmatprep.subr.bf16.mxu1 %v3142_v62  ;;  %v3217_v62 = vld [vmem:[#allocation11 + $0x204] ss:$28 sps:$4 sm:$0xff]  }
 0x345   :  { %2203 = vmatpush1.bf16.msra.mxu1 %v3140_v63  ;;  %v3215_v63 = vld [vmem:[#allocation11 + $0x200] ss:$28 sps:$4 sm:$0xff]  }
 0x346   :  { %2204 = vmatprep.subr.bf16.mxu1 %v3148_v0  ;;  %v3220_v0 = vld [vmem:[#allocation11 + $0x23c] ss:$28 sps:$4 sm:$0xff]  }
 0x349   :  { %2205 = vmatpush1.bf16.msra.mxu1 %v3146_v1  ;;  %v3218_v1 = vld [vmem:[#allocation11 + $0x238] ss:$28 sps:$4 sm:$0xff]  }
 0x34a   :  { %2206 = vmatprep.subr.bf16.mxu1 %v3154_v2  ;;  %v3223_v2 = vld [vmem:[#allocation11 + $0x274] ss:$28 sps:$4 sm:$0xff]  }
 0x34d   :  { %2207 = vmatpush1.bf16.msra.mxu1 %v3152_v3  ;;  %v3221_v3 = vld [vmem:[#allocation11 + $0x270] ss:$28 sps:$4 sm:$0xff]  }
 0x34e   :  { %2208 = vmatprep.subr.bf16.mxu1 %v3160_v4  ;;  %v3226_v4 = vld [vmem:[#allocation11 + $0x2ac] ss:$28 sps:$4 sm:$0xff]  }
 0x351   :  { %2209 = vmatpush1.bf16.msra.mxu1 %v3158_v5  ;;  %v3224_v5 = vld [vmem:[#allocation11 + $0x2a8] ss:$28 sps:$4 sm:$0xff]  }
 0x352   :  { %2210 = vmatprep.subr.bf16.mxu1 %v3166_v8  ;;  %v3232_v8 = vld [vmem:[#allocation11 + $0x31c] ss:$28 sps:$4 sm:$0xff]  }
 0x355   :  { %2211 = vmatpush1.bf16.msra.mxu1 %v3164_v9  ;;  %v3230_v9 = vld [vmem:[#allocation11 + $0x318] ss:$28 sps:$4 sm:$0xff]  }
 0x356   :  { %2212 = vmatprep.subr.bf16.mxu1 %v3172_v12  ;;  %v3236_v12 = vld [vmem:[#allocation11 + $0x1d8] ss:$28 sps:$4 sm:$0xff]  }
 0x359   :  { %2213 = vmatpush1.bf16.msra.mxu1 %v3170_v13  ;;  %v3237_v13 = vld [vmem:[#allocation11 + $0x18] ss:$28 sps:$4 sm:$0xff]  }
 0x35a   :  { %2214 = vmatprep.subr.bf16.mxu1 %v3178_v16  ;;  %v3240_v16 = vld [vmem:[#allocation11 + $0x248] ss:$28 sps:$4 sm:$0xff]  }
 0x35d   :  { %2215 = vmatpush1.bf16.msra.mxu1 %v3176_v17  ;;  %v3241_v17 = vld [vmem:[#allocation11 + $0x88] ss:$28 sps:$4 sm:$0xff]  }
 0x35e   :  { %2216 = vmatprep.subr.bf16.mxu1 %v3184_v20  ;;  %v3244_v20 = vld [vmem:[#allocation11 + $0x2b8] ss:$28 sps:$4 sm:$0xff]  }
 0x361   :  { %2217 = vmatpush1.bf16.msra.mxu1 %v3182_v22  ;;  %v3246_v22 = vld [vmem:[#allocation11 + $0x2f0] ss:$28 sps:$4 sm:$0xff]  }
 0x362   :  { %2229 = vmatprep.subr.bf16.mxu1 %v3190_v24  ;;  %v3248_v24 = vld [vmem:[#allocation11 + $0x328] ss:$28 sps:$4 sm:$0xff]  }
 0x3f7   :  { %v1430_v31 = vpop.f32.mrb[4].mxu1 }
 0x3f8   :  { %v1431_v32 = vadd.f32 %v1430_v31, %v1309_v28  ;;  %v1432_v33 = vpop.f32.mrb[5].mxu1  ;;  %v1593_v31 = vsub.s32 4, %v3684_v26 }
 0x3f9   :  { %v1433_v34 = vadd.f32 %v1432_v33, %v1313_v30  ;;  %v1434_v35 = vpop.f32.mrb[6].mxu1  ;;  %v1597_v33 = vsub.s32 5, %v3684_v26 }
 0x3fa   :  { %3264 = vtanh.f32 %v1431_v32  ;;  %v1435_v36 = vadd.f32 %v1434_v35, %v1309_v28  ;;  %v1436_v37 = vpop.f32.mrb[7].mxu1  ;;  %v3250_v28 = vld [vmem:[#allocation11 + $0x360] ss:$28 sps:$4 sm:$0xff]  }
 0x3fb   :  { %3266 = vtanh.f32 %v1433_v34  ;;  %v1437_v38 = vadd.f32 %v1436_v37, %v1313_v30  ;;  %v3251_v30 = vld [vmem:[#allocation11 + $0x1a0] ss:$28 sps:$4 sm:$0xff]  }
 0x3fc   :  { %3268 = vtanh.f32 %v1435_v36  ;;  %v3724_v32 = vld [vmem:[%s3772_s9] sm:$0xff]  ;;  %s3527_s9 = smov [#allocation14]  }
 0x3fd   :  { %3270 = vtanh.f32 %v1437_v38  ;;  %v1578_v34 = vrot.slane %v3724_v32, %v3687_v27  ;;  %v1594_v35 = vrot.slane %v3724_v32, %v1593_v31  ;;  %v1582_v36 = vrot.slane %v3724_v32, %v3693_v29  ;;  %s2475_s19 = sshll.u32 %s3527_s9, 4  ;;  %s2476_s19 = int_to_ptr.vmem [resolvable:$true] %s2475_s19 }
 0x3fe   :  { %v1598_v37 = vrot.slane %v3724_v32, %v1597_v33  ;;  %s3460_s20 = scalar_lea.vmem %s2476_s19, 512  ;;  %p3465_p7 = scmp.lt.s32.totalorder %s2476_s19, %s2476_s19 }
 0x3ff   :  { %p3461_p6 = scmp.ne.s32.totalorder %s2476_s19, %s3460_s20  ;;  %p3466_p8 = scmp.lt.s32.totalorder %s3460_s20, %s3460_s20 }
 0x401   :  { %p3467_p9 = por %p3466_p8, %p3465_p7 }
 0x403   :  { %p3468_p10 = pnand %p3467_p9, %p3461_p6 }
 0x404   :  { %v3265_v39 = vpop.eup %3264 }
 0x405   :  { %v3267_v40 = vpop.eup %3266 }
 0x406   :  { %v3269_v41 = vpop.eup %3268 }
 0x407   :  { %v3271_v42 = vpop.eup %3270  ;;  %v3708_v43 = vpack.c.bf16 %v3269_v41, %v3265_v39 }
 0x408   :  { %v3710_v44 = vpack.c.bf16 %v3271_v42, %v3267_v40 }
 0x40a   :  { %2218 = vmatprep.mubr.bf16.mxu1 %v3710_v44  ;;  %2304 = vmatprep.mubr.bf16.mxu0 %v3710_v44 }
 0x40b   :  { %2219 = vmatmul.mubr.bf16.vlgmr.msra.gmra.mrb[8].mxu1 %v3708_v43  ;;  %2305 = vmatmul.mubr.bf16.vlgmr.msra.gmra.mrb[4].mxu0 %v3708_v43 }
 0x40c   :  { %2230 = vmatpush1.bf16.msra.mxu1 %v3188_v45  ;;  %2261 = vmatprep.mubr.bf16.mxu1 %v3710_v44 }
 0x40d   :  { %2231 = vmatprep.subr.bf16.mxu1 %v3193_v46 }
 0x410   :  { %2232 = vmatpush1.bf16.msra.mxu1 %v3191_v47 }
 0x411   :  { %2233 = vmatprep.subr.bf16.mxu1 %v3196_v48 }
 0x414   :  { %2234 = vmatpush1.bf16.msra.mxu1 %v3194_v49 }
 0x415   :  { %2235 = vmatprep.subr.bf16.mxu1 %v3199_v50 }
 0x418   :  { %2236 = vmatpush1.bf16.msra.mxu1 %v3197_v51 }
 0x419   :  { %2237 = vmatprep.subr.bf16.mxu1 %v3202_v52 }
 0x41c   :  { %2238 = vmatpush1.bf16.msra.mxu1 %v3200_v53 }
 0x41d   :  { %2239 = vmatprep.subr.bf16.mxu1 %v3205_v54 }
 0x420   :  { %2240 = vmatpush1.bf16.msra.mxu1 %v3203_v55 }
 0x421   :  { %2241 = vmatprep.subr.bf16.mxu1 %v3208_v56 }
 0x424   :  { %2242 = vmatpush1.bf16.msra.mxu1 %v3206_v57 }
 0x425   :  { %2243 = vmatprep.subr.bf16.mxu1 %v3211_v58 }
 0x428   :  { %2244 = vmatpush1.bf16.msra.mxu1 %v3209_v59 }
 0x429   :  { %2245 = vmatprep.subr.bf16.mxu1 %v3214_v60 }
 0x42c   :  { %2246 = vmatpush1.bf16.msra.mxu1 %v3212_v61 }
 0x42d   :  { %2247 = vmatprep.subr.bf16.mxu1 %v3217_v62 }
 0x430   :  { %2248 = vmatpush1.bf16.msra.mxu1 %v3215_v63 }
 0x431   :  { %2249 = vmatprep.subr.bf16.mxu1 %v3220_v0 }
 0x434   :  { %2250 = vmatpush1.bf16.msra.mxu1 %v3218_v1 }
 0x435   :  { %2251 = vmatprep.subr.bf16.mxu1 %v3223_v2 }
 0x438   :  { %2252 = vmatpush1.bf16.msra.mxu1 %v3221_v3 }
 0x439   :  { %2253 = vmatprep.subr.bf16.mxu1 %v3226_v4 }
 0x43c   :  { %2254 = vmatpush1.bf16.msra.mxu1 %v3224_v5 }
 0x43d   :  { %2255 = vmatprep.subr.bf16.mxu1 %v3229_v6 }
 0x440   :  { %2256 = vmatpush1.bf16.msra.mxu1 %v3227_v7 }
 0x441   :  { %2257 = vmatprep.subr.bf16.mxu1 %v3232_v8 }
 0x444   :  { %2258 = vmatpush1.bf16.msra.mxu1 %v3230_v9 }
 0x445   :  { %2259 = vmatprep.subr.bf16.mxu1 %v3235_v10 }
 0x448   :  { %2260 = vmatpush1.bf16.msra.mxu1 %v3233_v11 }
 0x449   :  { %2787 = vmatprep.subr.bf16.mxu1 %v3236_v12 }
 0x44b   :  { %2262 = vmatmul.mubr.bf16.vlgmr.msra.gmra.mrb[12].mxu1 %v3708_v43 }
 0x44c   :  { %2788 = vmatpush3.bf16.msra.mxu1 %v3237_v13  ;;  %2347 = vmatprep.mubr.bf16.mxu1 %v3710_v44 }
 0x44d   :  { %2789 = vmatprep.subr.bf16.mxu1 %v3238_v14 }
 0x450   :  { %2790 = vmatpush3.bf16.msra.mxu1 %v3239_v15 }
 0x451   :  { %2791 = vmatprep.subr.bf16.mxu1 %v3240_v16 }
 0x454   :  { %2792 = vmatpush3.bf16.msra.mxu1 %v3241_v17 }
 0x455   :  { %2793 = vmatprep.subr.bf16.mxu1 %v3242_v18 }
 0x458   :  { %2794 = vmatpush3.bf16.msra.mxu1 %v3243_v19 }
 0x459   :  { %2795 = vmatprep.subr.bf16.mxu1 %v3244_v20 }
 0x45c   :  { %2796 = vmatpush3.bf16.msra.mxu1 %v3245_v21 }
 0x45d   :  { %2797 = vmatprep.subr.bf16.mxu1 %v3246_v22 }
 0x460   :  { %2798 = vmatpush3.bf16.msra.mxu1 %v3247_v23 }
 0x461   :  { %2799 = vmatprep.subr.bf16.mxu1 %v3248_v24 }
 0x464   :  { %2800 = vmatpush3.bf16.msra.mxu1 %v3249_v25 }
 0x465   :  { %2801 = vmatprep.subr.bf16.mxu1 %v3250_v28 }
 0x468   :  { %2802 = vmatpush3.bf16.msra.mxu1 %v3251_v30 }
 0x46b   :  { %2348 = vmatmul.mubr.bf16.vlgmr.msra.gmra.mrb[16].mxu1 %v3708_v43 }
 0x4de   :  { %v2220_v38 = vpop.f32.mrb[8].mxu1  ;;  %v2306_v39 = vpop.f32.mrb[4].mxu0 }
 0x4df   :  { %v2221_v40 = vadd.f32 %v2220_v38, %v1578_v34  ;;  %v2307_v41 = vadd.f32 %v2306_v39, %v1594_v35  ;;  %v2222_v42 = vpop.f32.mrb[9].mxu1  ;;  %v2308_v43 = vpop.f32.mrb[5].mxu0 }
 0x4e0   :  { %v2223_v44 = vadd.f32 %v2222_v42, %v1582_v36  ;;  %v2309_v45 = vadd.f32 %v2308_v43, %v1598_v37  ;;  %v2224_v46 = vpop.f32.mrb[10].mxu1  ;;  %v2310_v47 = vpop.f32.mrb[6].mxu0 }
 0x4e1   :  { %v2773_v48 = vmul.f32 -1.442695, %v2221_v40  ;;  %v2777_v49 = vmul.f32 -1.442695, %v2307_v41  ;;  %v2225_v27 = vadd.f32 %v2224_v46, %v1578_v34  ;;  %v2311_v50 = vadd.f32 %v2310_v47, %v1594_v35  ;;  %v2226_v51 = vpop.f32.mrb[11].mxu1  ;;  %v2312_v52 = vpop.f32.mrb[7].mxu0 }
 0x4e2   :  { %v2774_v53 = vmul.f32 -1.442695, %v2223_v44  ;;  %v2778_v29 = vmul.f32 -1.442695, %v2309_v45  ;;  %v2227_v54 = vadd.f32 %v2226_v51, %v1582_v36  ;;  %v2313_v55 = vadd.f32 %v2312_v52, %v1598_v37 }
 0x4e3   :  { %3272 = vpow2.f32 %v2773_v48  ;;  %v2780_v56 = vmul.f32 -1.442695, %v2225_v27  ;;  %v2784_v57 = vmul.f32 -1.442695, %v2311_v50 }
 0x4e4   :  { %3274 = vpow2.f32 %v2777_v49  ;;  %v2781_v58 = vmul.f32 -1.442695, %v2227_v54  ;;  %v2785_v59 = vmul.f32 -1.442695, %v2313_v55 }
 0x4e5   :  { %3276 = vpow2.f32 %v2774_v53 }
 0x4e6   :  { %3278 = vpow2.f32 %v2778_v29 }
 0x4e7   :  { %3471 = shalt.err (!%p3468_p10)
}
 0x4e8   :  { %s3472_s18 = scalar_lea.hbm %s3774_s11, 512 }
 0x4e9   :  { %p3473_p11 = scmp.ne.s32.totalorder %s3774_s11, %s3472_s18  ;;  %p3476_p12 = scmp.lt.u32.totalorder %s3472_s18, %s3774_s11 }
 0x4eb   :  { %p3478_p13 = pnand %p3476_p12, %p3473_p11 }
 0x4ed   :  { %3481 = shalt.err (!%p3478_p13)
}
 0x4ee   :  { %s3528_s26 = smov 256   ;;  %s3529_s29 = smov 16   ;;  %3280 = vpow2.f32 %v2780_v56  ;;  %v3273_v60 = vpop.eup %3272  ;;  %v1585_v20 = vsub.s32 2, %v3684_v26  ;;  %v1589_v21 = vsub.s32 3, %v3684_v26  ;;  %v1601_v49 = vsub.s32 6, %v3684_v26 }
 0x4ef   :  { %2481 = dma.vmem_to_hbm [thread:$0]  %s2476_s19, 512, %s3774_s11, [#allocation15], %s3528_s26, %s3528_s26, %s3529_s29   ;;  %3282 = vpow2.f32 %v2784_v57  ;;  %v3275_v61 = vpop.eup %3274  ;;  %v2398_v62 = vadd.f32 1.0, %v3273_v60 }
 0x4f0   :  { %3284 = vpow2.f32 %v2781_v58  ;;  %v3277_v63 = vpop.eup %3276  ;;  %v2402_v0 = vadd.f32 1.0, %v3275_v61  ;;  %v1586_v22 = vrot.slane %v3724_v32, %v1585_v20  ;;  %v1590_v23 = vrot.slane %v3724_v32, %v1589_v21  ;;  %s3530_s11 = smov [#allocation13]  }
 0x4f1   :  { %3286 = vpow2.f32 %v2785_v59  ;;  %v3279_v1 = vpop.eup %3278  ;;  %v2399_v2 = vadd.f32 1.0, %v3277_v63  ;;  %v1602_v53 = vrot.slane %v3724_v32, %v1601_v49  ;;  %s2463_s0 = sshll.u32 %s3530_s11, 4  ;;  %s2464_s0 = int_to_ptr.vmem [resolvable:$true] %s2463_s0 }
 0x4f2   :  { %3288 = vrcp.f32 %v2398_v62  ;;  %v2403_v4 = vadd.f32 1.0, %v3279_v1  ;;  %s3482_s15 = scalar_lea.vmem %s2464_s0, 1792  ;;  %p3487_p1 = scmp.lt.s32.totalorder %s2464_s0, %s2464_s0 }
 0x4f3   :  { %3290 = vrcp.f32 %v2402_v0  ;;  %p3483_p0 = scmp.ne.s32.totalorder %s2464_s0, %s3482_s15  ;;  %p3488_p2 = scmp.lt.s32.totalorder %s3482_s15, %s3482_s15 }
 0x4f4   :  { %3292 = vrcp.f32 %v2399_v2 }
 0x4f5   :  { %3294 = vrcp.f32 %v2403_v4  ;;  %p3489_p3 = por %p3488_p2, %p3487_p1 }
 0x4f7   :  { %p3490_p4 = pnand %p3489_p3, %p3483_p0 }
 0x4f8   :  { %v3281_v3 = vpop.eup %3280 }
 0x4f9   :  { %v3283_v5 = vpop.eup %3282  ;;  %v2405_v6 = vadd.f32 1.0, %v3281_v3 }
 0x4fa   :  { %v3285_v7 = vpop.eup %3284  ;;  %v2409_v8 = vadd.f32 1.0, %v3283_v5 }
 0x4fb   :  { %v3287_v9 = vpop.eup %3286  ;;  %3296 = vrcp.f32 %v2405_v6  ;;  %v2406_v10 = vadd.f32 1.0, %v3285_v7 }
 0x4fc   :  { %3298 = vrcp.f32 %v2409_v8  ;;  %v2410_v11 = vadd.f32 1.0, %v3287_v9  ;;  %v3289_v12 = vpop.eup %3288 }
 0x4fd   :  { %3300 = vrcp.f32 %v2406_v10  ;;  %v3291_v13 = vpop.eup %3290  ;;  %2440 = vst [vmem:[#allocation13] sm:$0xff] %v3289_v12 }
 0x4fe   :  { %3302 = vrcp.f32 %v2410_v11  ;;  %v3293_v14 = vpop.eup %3292  ;;  %2444 = vst [vmem:[#allocation13 + $0x20] sm:$0xff] %v3291_v13 }
 0x4ff   :  { %v3295_v15 = vpop.eup %3294  ;;  %2441 = vst [vmem:[#allocation13 + $0x8] sm:$0xff] %v3293_v14 }
 0x500   :  { %2445 = vst [vmem:[#allocation13 + $0x28] sm:$0xff] %v3295_v15 }
 0x505   :  { %v3297_v16 = vpop.eup %3296 }
 0x506   :  { %v3299_v17 = vpop.eup %3298  ;;  %2447 = vst [vmem:[#allocation13 + $0x38] sm:$0xff] %v3297_v16 }
 0x507   :  { %v3301_v18 = vpop.eup %3300  ;;  %2451 = vst [vmem:[#allocation13 + $0x58] sm:$0xff] %v3299_v17 }
 0x508   :  { %v3303_v19 = vpop.eup %3302  ;;  %2448 = vst [vmem:[#allocation13 + $0x40] sm:$0xff] %v3301_v18 }
 0x509   :  { %2452 = vst [vmem:[#allocation13 + $0x60] sm:$0xff] %v3303_v19 }
 0x51e   :  { %v2263_v24 = vpop.f32.mrb[12].mxu1 }
 0x51f   :  { %v2264_v25 = vadd.f32 %v2263_v24, %v1586_v22  ;;  %v2265_v28 = vpop.f32.mrb[13].mxu1 }
 0x520   :  { %v2266_v30 = vadd.f32 %v2265_v28, %v1590_v23  ;;  %v2267_v31 = vpop.f32.mrb[14].mxu1 }
 0x521   :  { %v2775_v33 = vmul.f32 -1.442695, %v2264_v25  ;;  %v2268_v34 = vadd.f32 %v2267_v31, %v1586_v22  ;;  %v2269_v35 = vpop.f32.mrb[15].mxu1 }
 0x522   :  { %v2776_v36 = vmul.f32 -1.442695, %v2266_v30  ;;  %v2270_v37 = vadd.f32 %v2269_v35, %v1590_v23 }
 0x523   :  { %3304 = vpow2.f32 %v2775_v33  ;;  %v2782_v38 = vmul.f32 -1.442695, %v2268_v34 }
 0x524   :  { %3306 = vpow2.f32 %v2776_v36  ;;  %v2783_v39 = vmul.f32 -1.442695, %v2270_v37 }
 0x525   :  { %3308 = vpow2.f32 %v2782_v38 }
 0x526   :  { %3310 = vpow2.f32 %v2783_v39 }
 0x52d   :  { %v3305_v40 = vpop.eup %3304 }
 0x52e   :  { %v3307_v41 = vpop.eup %3306  ;;  %v2400_v42 = vadd.f32 1.0, %v3305_v40 }
 0x52f   :  { %v3309_v43 = vpop.eup %3308  ;;  %v2401_v44 = vadd.f32 1.0, %v3307_v41 }
 0x530   :  { %v3311_v45 = vpop.eup %3310  ;;  %3312 = vrcp.f32 %v2400_v42  ;;  %v2407_v46 = vadd.f32 1.0, %v3309_v43 }
 0x531   :  { %3314 = vrcp.f32 %v2401_v44  ;;  %v2408_v47 = vadd.f32 1.0, %v3311_v45 }
 0x532   :  { %3316 = vrcp.f32 %v2407_v46 }
 0x533   :  { %3318 = vrcp.f32 %v2408_v47 }
 0x53a   :  { %v3313_v48 = vpop.eup %3312 }
 0x53b   :  { %v3315_v27 = vpop.eup %3314  ;;  %2442 = vst [vmem:[#allocation13 + $0x10] sm:$0xff] %v3313_v48 }
 0x53c   :  { %v3317_v50 = vpop.eup %3316  ;;  %2443 = vst [vmem:[#allocation13 + $0x18] sm:$0xff] %v3315_v27 }
 0x53d   :  { %v3319_v51 = vpop.eup %3318  ;;  %2449 = vst [vmem:[#allocation13 + $0x48] sm:$0xff] %v3317_v50 }
 0x53e   :  { %2450 = vst [vmem:[#allocation13 + $0x50] sm:$0xff] %v3319_v51  ;;  %v2803_v52 = vpop.f32.mrb[16].mxu1 }
 0x53f   :  { %v2804_v29 = vpop.f32.mrb[17].mxu1 }
 0x540   :  { %v2805_v54 = vadd.f32 %v2804_v29, %v2803_v52  ;;  %v2806_v55 = vpop.f32.mrb[18].mxu1 }
 0x541   :  { %v2807_v56 = vpop.f32.mrb[19].mxu1 }
 0x542   :  { %v2350_v57 = vadd.f32 %v2805_v54, %v1602_v53  ;;  %v2808_v58 = vadd.f32 %v2807_v56, %v2806_v55 }
 0x544   :  { %v2779_v59 = vmul.f32 -1.442695, %v2350_v57  ;;  %v2353_v60 = vadd.f32 %v2808_v58, %v1602_v53 }
 0x546   :  { %3320 = vpow2.f32 %v2779_v59  ;;  %v2786_v26 = vmul.f32 -1.442695, %v2353_v60 }
 0x548   :  { %3322 = vpow2.f32 %v2786_v26 }
 0x550   :  { %v3321_v61 = vpop.eup %3320 }
 0x551   :  { %v2404_v62 = vadd.f32 1.0, %v3321_v61 }
 0x552   :  { %v3323_v63 = vpop.eup %3322 }
 0x553   :  { %3324 = vrcp.f32 %v2404_v62  ;;  %v2411_v0 = vadd.f32 1.0, %v3323_v63 }
 0x555   :  { %3326 = vrcp.f32 %v2411_v0 }
 0x55d   :  { %v3325_v32 = vpop.eup %3324 }
 0x55e   :  { %2446 = vst [vmem:[#allocation13 + $0x30] sm:$0xff] %v3325_v32 }
 0x55f   :  { %v3327_v1 = vpop.eup %3326 }
 0x560   :  { %2453 = vst [vmem:[#allocation13 + $0x68] sm:$0xff] %v3327_v1 }
 0x561   :  { %3493 = shalt.err (!%p3490_p4)
}
 0x562   :  { %s3494_s17 = scalar_lea.hbm %s3773_s10, 1792 }
 0x563   :  { %p3495_p5 = scmp.ne.s32.totalorder %s3773_s10, %s3494_s17  ;;  %p3498_p6 = scmp.lt.u32.totalorder %s3494_s17, %s3773_s10 }
 0x565   :  { %p3500_p7 = pnand %p3498_p6, %p3495_p5 }
 0x567   :  { %3503 = shalt.err (!%p3500_p7)
}
 0x568   :  { %s3531_s3 = smov 896   ;;  %s3532_s4 = smov 56  }
 0x569   :  { %2469 = dma.vmem_to_hbm [thread:$0]  %s2464_s0, 1792, %s3773_s10, [#allocation4], %s3531_s3, %s3531_s3, %s3532_s4  }
 0x56a   :  { %3512 = dma.done.wait [#allocation4], 1792  }
 0x56b   :  { %3513 = vsyncadd [#allocation4], 4294965504 }
 0x56c   :  { %3514 = dma.done.wait [#allocation15], 512  }
 0x56d   :  { %3515 = vsyncadd [#allocation15], 4294966784 }
 0x56e   :  { %2488 = vsyncpa [#allocation3], 1 }
 0x56f   :  { %2489 = vsyncpa [#allocation6], 1 }
 0x570   :  { %2490 = vsyncpa [#allocation9], 1 }
 0x571   :  { %2491 = vsyncpa [#allocation12], 1 }
 0x572   :  { %2492 = vsyncpa [#allocation4], 1 }
 0x573   :  { %2493 = vsyncpa [#allocation15], 1 }

</bundles_post_ra>
